<compile_context>
chip_gen: v7x
topology: tpu7x:2x2x1
jax: 0.10.0
libtpu: 0.0.40
codegen_flags: <defaults>
</compile_context>

<pallas_src>
import functools

import jax
import jax.numpy as jnp
from jax.experimental import pallas as pl
from jax.experimental.pallas import tpu as pltpu

NUM_GROUPS = 32
EPS = 1e-6
LOG2E = 1.4426950408889634


def _vmem_budget_bytes():
    """Generation-aware VMEM budget: ~85% of physical (108 MiB on v5e/v6e,
    ~54 MiB on v7x); conservative 48 MiB fallback if the query fails."""
    try:
        info = pltpu.get_tpu_info()
        cap = getattr(info, "vmem_capacity_bytes", None)
        if cap:
            return int(cap * 0.85)
    except Exception:
        pass
    return 48 * 1024 * 1024


# -----------------------------------------------------------------------------
# Kernel 1: GroupNorm statistics -> per-channel affine (scale, shift) so that
#   xn = x * scale + shift,  scale = gamma * rsqrt(var + eps),
#                            shift = beta - mean * scale
# -----------------------------------------------------------------------------
def groupnorm_stats_kernel(x_ref, g2c_ref, c2g_ref, gamma_ref, beta_ref,
                           aff_ref, sum_ref, sq_ref, *, inv_n):
    si = pl.program_id(1)

    @pl.when(si == 0)
    def _():
        sum_ref[...] = jnp.zeros_like(sum_ref)
        sq_ref[...] = jnp.zeros_like(sq_ref)

    x = x_ref[0]                                              # (C, TS) f32
    sum_ref[...] += jnp.sum(x, axis=1, keepdims=True)         # (C, 1)
    sq_ref[...] += jnp.sum(x * x, axis=1, keepdims=True)      # (C, 1)

    @pl.when(si == pl.num_programs(1) - 1)
    def _():
        # group aggregation with small one-hots (one packed matmul per hop)
        stats = jnp.concatenate([sum_ref[...], sq_ref[...]], axis=1)   # (C, 2)
        g_stats = jnp.dot(g2c_ref[...], stats,
                          preferred_element_type=jnp.float32)          # (G, 2)
        pc = jnp.dot(c2g_ref[...], g_stats,
                     preferred_element_type=jnp.float32) * inv_n       # (C, 2)
        mean = pc[:, 0:1]
        # TODO(synk): use a shifted/compensated accumulation if inputs may
        # have a large mean (E[x^2]-mean^2 can cancel in f32).
        var = pc[:, 1:2] - mean * mean                                 # biased
        inv = jax.lax.rsqrt(var + EPS)
        scale = inv * gamma_ref[...]                                   # (C, 1)
        shift = beta_ref[...] - mean * scale                           # (C, 1)
        aff_ref[0] = jnp.concatenate([scale, shift], axis=1)           # (C, 2)


# -----------------------------------------------------------------------------
# Kernel 2: normalize + fused QKV 1x1 convolution (one (3C, C) MXU pass).
# Emits: qv  (B, 2C, HW) bf16  -- rows [0:C] = Q pre-scaled by C^-0.5*log2(e),
#                                 rows [C:2C] = V
#        kT  (B, HW, C)  bf16  -- K transposed to spatial-major (amortizes the
#                                 transpose once per element instead of per
#                                 kv step in the attention loop)
#        xn  (B, C, HW)  bf16  -- normalized input for the residual path
# -----------------------------------------------------------------------------
def norm_qkv_kernel(x_ref, aff_ref, wqkv_ref, bqkv_ref,
                    qv_ref, kt_ref, xn_ref, *, q_scale):
    C = wqkv_ref.shape[1]
    x = x_ref[0]                                              # (C, TP) f32
    xn = x * aff_ref[0, :, 0:1] + aff_ref[0, :, 1:2]          # (C, TP) f32
    xn_bf = xn.astype(jnp.bfloat16)
    y = jnp.dot(wqkv_ref[...], xn_bf,                         # bf16 in, f32 acc
                preferred_element_type=jnp.float32) + bqkv_ref[...]   # (3C, TP)
    q = (y[0:C] * q_scale).astype(jnp.bfloat16)               # (C, TP)
    v = y[2 * C:3 * C].astype(jnp.bfloat16)                   # (C, TP)
    qv_ref[0] = jnp.concatenate([q, v], axis=0)               # (2C, TP)
    kt_ref[0] = y[C:2 * C].T.astype(jnp.bfloat16)             # (TP, C)
    xn_ref[0] = xn_bf                                         # (C, TP)


# -----------------------------------------------------------------------------
# Kernel 3: flash attention (online softmax over KV tiles, exp2 domain)
#           + output projection + residual with the (bf16) normalized input.
# K/V are either VMEM-resident per batch (sliced with pl.ds per kv step) or
# streamed as (tk)-wide tiles, chosen by the wrapper from the VMEM budget.
# -----------------------------------------------------------------------------
def flash_attn_kernel(xn_ref, q_ref, kt_ref, v_ref, wo_ref, bo_ref,
                      o_ref, m_ref, l_ref, acc_ref, *, tk, kv_resident):
    ki = pl.program_id(2)

    @pl.when(ki == 0)
    def _():
        m_ref[...] = jnp.full(m_ref.shape, -jnp.inf, jnp.float32)
        l_ref[...] = jnp.zeros_like(l_ref)
        acc_ref[...] = jnp.zeros_like(acc_ref)

    q = q_ref[0]                                              # (C, TQ) bf16 (pre-scaled)
    if kv_resident:
        off = pl.multiple_of(ki * tk, 128 if tk % 128 == 0 else tk)
        kt = kt_ref[0, pl.ds(off, tk), :]                     # (TK, C) bf16
        v = v_ref[0, :, pl.ds(off, tk)]                       # (C, TK) bf16
    else:
        kt = kt_ref[0]                                        # (TK, C) bf16
        v = v_ref[0]                                          # (C, TK) bf16

    # scores^T in the exp2 domain: native (TK, C) x (C, TQ) MN,K matmul.
    s = jnp.dot(kt, q, preferred_element_type=jnp.float32)    # (TK, TQ) f32

    m_prev = m_ref[...]                                       # (1, TQ)
    m_new = jnp.maximum(m_prev, jnp.max(s, axis=0, keepdims=True))
    alpha = jnp.exp2(m_prev - m_new)                          # (1, TQ)
    p = jnp.exp2(s - m_new)                                   # (TK, TQ) f32
    l_ref[...] = alpha * l_ref[...] + jnp.sum(p, axis=0, keepdims=True)
    acc_ref[...] = alpha * acc_ref[...] + jnp.dot(
        v, p.astype(v.dtype), preferred_element_type=jnp.float32)    # (C, TQ)
    m_ref[...] = m_new

    @pl.when(ki == pl.num_programs(2) - 1)
    def _():
        inv_l = pl.reciprocal(l_ref[...], approx=True)        # EUP, not VALU
        attn = acc_ref[...] * inv_l                           # (C, TQ) f32
        proj = jnp.dot(wo_ref[...], attn.astype(wo_ref.dtype),
                       preferred_element_type=jnp.float32) + bo_ref[...]
        o_ref[0] = (xn_ref[0].astype(jnp.float32) + proj).astype(o_ref.dtype)


# -----------------------------------------------------------------------------
# Wrapper
# -----------------------------------------------------------------------------
def nonlocal_block(x_nchw, params, *, tq=512, tk=1024, tn=1024):
    B, C, H, W = x_nchw.shape
    HW = H * W
    G = NUM_GROUPS
    assert C % G == 0, "C must be a multiple of 32 (GroupNorm groups)"

    def pick(t):
        t = min(t, HW)
        assert HW % t == 0 and (t == HW or t % 128 == 0), (
            "H*W must be divisible by the tile size; tiles must be multiples "
            "of 128 (lane alignment) or equal to H*W")
        return t
    tq, tk, tn = pick(tq), pick(tk), pick(tn)

    # NCHW-native layout: only a free reshape, no transposes.
    x = x_nchw.reshape(B, C, HW).astype(jnp.float32)

    # group-membership one-hots (tiny) instead of a dense (C, C) mask
    grp = jnp.arange(C, dtype=jnp.int32) // (C // G)
    c2g = (grp[:, None] == jnp.arange(G, dtype=jnp.int32)[None, :]
           ).astype(jnp.float32)                              # (C, G)
    g2c = c2g.T                                               # (G, C)

    col = lambda v: jnp.asarray(v, jnp.float32).reshape(-1, 1)
    gamma, beta = col(params["gamma"]), col(params["beta"])
    wqkv = jnp.concatenate([params["wq"], params["wk"], params["wv"]],
                           axis=0).astype(jnp.bfloat16)       # (3C, C)
    bqkv = jnp.concatenate([params["bq"], params["bk"], params["bv"]]
                           ).reshape(3 * C, 1).astype(jnp.float32)
    wo = jnp.asarray(params["wo"], jnp.bfloat16)              # (C_out, C_in)
    bo = col(params["bo"])

    vmem_budget = _vmem_budget_bytes()
    cparams = lambda sem: pltpu.CompilerParams(
        dimension_semantics=sem, vmem_limit_bytes=vmem_budget)

    # Decide resident vs. streamed K/V from the attention pass's VMEM needs
    # (double-buffered inputs/outputs + f32 accumulator + weights).
    def flash_vmem_bytes(kv_block):
        bf, f32 = 2, 4
        b = 0
        b += 2 * C * tq * bf            # q tiles (double-buffered)
        b += 2 * C * tq * bf            # xn tiles
        b += 2 * kv_block * C * bf      # K^T
        b += 2 * C * kv_block * bf      # V
        b += 2 * C * tq * f32           # output tile
        b += 2 * (C * C * bf + C * f32)  # wo, bo
        b += C * tq * f32 + 2 * tq * f32  # acc, m, l scratch
        return b
    kv_resident = flash_vmem_bytes(HW) <= vmem_budget

    # ---- 1) GroupNorm statistics --------------------------------------------
    affine = pl.pallas_call(
        functools.partial(groupnorm_stats_kernel, inv_n=1.0 / ((C // G) * HW)),
        out_shape=jax.ShapeDtypeStruct((B, C, 2), jnp.float32),
        grid_spec=pltpu.PrefetchScalarGridSpec(
            num_scalar_prefetch=0,
            grid=(B, HW // tn),
            in_specs=[
                pl.BlockSpec((1, C, tn), lambda b, s: (b, 0, s)),   # x
                pl.BlockSpec((G, C), lambda b, s: (0, 0)),          # one-hot G<-C
                pl.BlockSpec((C, G), lambda b, s: (0, 0)),          # one-hot C<-G
                pl.BlockSpec((C, 1), lambda b, s: (0, 0)),          # gamma
                pl.BlockSpec((C, 1), lambda b, s: (0, 0)),          # beta
            ],
            out_specs=pl.BlockSpec((1, C, 2), lambda b, s: (b, 0, 0)),
            scratch_shapes=[pltpu.VMEM((C, 1), jnp.float32),        # sum
                            pltpu.VMEM((C, 1), jnp.float32)],       # sum sq
        ),
        compiler_params=cparams(("parallel", "arbitrary")),
    )(x, g2c, c2g, gamma, beta)

    # ---- 2) fused QKV projection of the normalized input --------------------
    qv, kT, xn = pl.pallas_call(
        functools.partial(norm_qkv_kernel, q_scale=float(C) ** -0.5 * LOG2E),
        out_shape=(jax.ShapeDtypeStruct((B, 2 * C, HW), jnp.bfloat16),
                   jax.ShapeDtypeStruct((B, HW, C), jnp.bfloat16),
                   jax.ShapeDtypeStruct((B, C, HW), jnp.bfloat16)),
        grid_spec=pltpu.PrefetchScalarGridSpec(
            num_scalar_prefetch=0,
            grid=(B, HW // tn),
            in_specs=[
                pl.BlockSpec((1, C, tn), lambda b, s: (b, 0, s)),   # x
                pl.BlockSpec((1, C, 2), lambda b, s: (b, 0, 0)),    # affine
                pl.BlockSpec((3 * C, C), lambda b, s: (0, 0)),      # wqkv (bf16)
                pl.BlockSpec((3 * C, 1), lambda b, s: (0, 0)),      # bqkv
            ],
            out_specs=[
                pl.BlockSpec((1, 2 * C, tn), lambda b, s: (b, 0, s)),  # q|v
                pl.BlockSpec((1, tn, C), lambda b, s: (b, s, 0)),      # k^T
                pl.BlockSpec((1, C, tn), lambda b, s: (b, 0, s)),      # xn
            ],
        ),
        compiler_params=cparams(("parallel", "parallel")),
    )(x, affine, wqkv, bqkv)

    # ---- 3) flash attention + output projection + residual ------------------
    if kv_resident:
        # One HBM read of K^T/V per batch (index_map constant over qi, ki);
        # kv tiles are sliced inside the kernel with pl.ds.
        kt_spec = pl.BlockSpec((1, HW, C), lambda b, qi, ki: (b, 0, 0))
        v_spec = pl.BlockSpec((1, C, HW), lambda b, qi, ki: (b, 1, 0))
    else:
        # Streamed fallback for very large HW / small VMEM parts.
        kt_spec = pl.BlockSpec((1, tk, C), lambda b, qi, ki: (b, ki, 0))
        v_spec = pl.BlockSpec((1, C, tk), lambda b, qi, ki: (b, 1, ki))

    out = pl.pallas_call(
        functools.partial(flash_attn_kernel, tk=tk, kv_resident=kv_resident),
        # TODO(synk): switch to bf16 output if downstream accepts it (halves
        # the attention-pass writeback bytes).
        out_shape=jax.ShapeDtypeStruct((B, C, HW), jnp.float32),
        grid_spec=pltpu.PrefetchScalarGridSpec(
            num_scalar_prefetch=0,
            grid=(B, HW // tq, HW // tk),
            in_specs=[
                pl.BlockSpec((1, C, tq), lambda b, qi, ki: (b, 0, qi)),  # xn
                pl.BlockSpec((1, C, tq), lambda b, qi, ki: (b, 0, qi)),  # q (rows 0:C)
                kt_spec,                                                 # k^T
                v_spec,                                                  # v (rows C:2C)
                pl.BlockSpec((C, C), lambda b, qi, ki: (0, 0)),          # wo (bf16)
                pl.BlockSpec((C, 1), lambda b, qi, ki: (0, 0)),          # bo
            ],
            out_specs=pl.BlockSpec((1, C, tq), lambda b, qi, ki: (b, 0, qi)),
            scratch_shapes=[
                pltpu.VMEM((1, tq), jnp.float32),    # running max m (exp2 dom)
                pltpu.VMEM((1, tq), jnp.float32),    # running sum l
                pltpu.VMEM((C, tq), jnp.float32),    # output accumulator
            ],
        ),
        compiler_params=cparams(("parallel", "parallel", "arbitrary")),
    )(xn, qv, kT, qv, wo, bo)

    return out.reshape(B, C, H, W)


# -----------------------------------------------------------------------------
# Pure-JAX reference: mirrors the PyTorch forward.  Matmul inputs are rounded
# to bf16 (with f32 accumulation) like the kernel; GroupNorm, softmax and the
# residual are f32.
# -----------------------------------------------------------------------------
def reference(x_nchw, params):
    B, C, H, W = x_nchw.shape
    HW = H * W
    bf = jnp.bfloat16
    x = x_nchw.astype(jnp.float32)

    xg = x.reshape(B, NUM_GROUPS, C // NUM_GROUPS, H, W)
    mean = xg.mean(axis=(2, 3, 4), keepdims=True)
    var = xg.var(axis=(2, 3, 4), keepdims=True)
    xn = ((xg - mean) / jnp.sqrt(var + EPS)).reshape(B, C, HW)
    xn = xn * params["gamma"].reshape(1, C, 1) + params["beta"].reshape(1, C, 1)

    def conv1x1(t, w, b):                       # w: (C_out, C_in) 1x1 conv
        return jnp.einsum("oc,bcp->bop", w.astype(bf), t.astype(bf),
                          preferred_element_type=jnp.float32) + b.reshape(1, C, 1)

    q = conv1x1(xn, params["wq"], params["bq"]).astype(bf)
    k = conv1x1(xn, params["wk"], params["bk"]).astype(bf)
    v = conv1x1(xn, params["wv"], params["bv"]).astype(bf)

    scores = jnp.einsum("bci,bcj->bij", q, k,
                        preferred_element_type=jnp.float32) * float(C) ** -0.5
    wgt = jax.nn.softmax(scores, axis=2)                        # over keys j
    attn = jnp.einsum("bcj,bij->bci", v, wgt.astype(bf),
                      preferred_element_type=jnp.float32)
    attn = conv1x1(attn, params["wo"], params["bo"])
    return (xn + attn).reshape(B, C, H, W)


def make_params(key, C):
    ks = jax.random.split(key, 10)
    p = {"gamma": 1.0 + 0.1 * jax.random.normal(ks[0], (C,), jnp.float32),
         "beta": 0.1 * jax.random.normal(ks[1], (C,), jnp.float32)}
    for i, name in enumerate(("q", "k", "v", "o")):
        p[f"w{name}"] = 0.2 * jax.random.normal(ks[2 + 2 * i], (C, C), jnp.float32)
        p[f"b{name}"] = 0.1 * jax.random.normal(ks[3 + 2 * i], (C,), jnp.float32)
    return p


if __name__ == "__main__":
    key = jax.random.PRNGKey(0)
    kx, kp = jax.random.split(key)

    # C must be a multiple of 32 (GroupNorm uses 32 groups); H*W a multiple of 128.
    B, C, H, W = 2, 32, 16, 16
    x = jax.random.normal(kx, (B, C, H, W), jnp.float32)
    params = make_params(kp, C)

    # Small tiles so the test exercises the multi-tile stats accumulator and
    # the multi-KV-tile online-softmax path with resident-KV slicing
    # (grids (2,2), (2,2), (2,2,2)).
    fn = jax.jit(functools.partial(nonlocal_block, tq=128, tk=128, tn=128))
    out = jax.block_until_ready(fn(x, params))

    ref = reference(x, params)
    assert out.shape == (B, C, H, W)
    # bf16 matmul inputs + bf16 residual path -> bf16-level tolerance.
    err = jnp.max(jnp.abs(out - ref))
    assert jnp.allclose(out, ref, atol=2.5e-2, rtol=2.5e-2), f"max abs diff {err}"

    print("KERNEL_OK")
</pallas_src>

<mosaic_0001>
module attributes {stable_mosaic.version = 11 : i64} {
  func.func @groupnorm_stats_kernel(%arg0: i32, %arg1: i32, %arg2: memref<1x32x128xf32, #tpu.memory_space<vmem>>, %arg3: memref<32x32xf32, #tpu.memory_space<vmem>>, %arg4: memref<32x32xf32, #tpu.memory_space<vmem>>, %arg5: memref<32x1xf32, #tpu.memory_space<vmem>>, %arg6: memref<32x1xf32, #tpu.memory_space<vmem>>, %arg7: memref<1x32x2xf32, #tpu.memory_space<vmem>>, %arg8: memref<32x1xf32, #tpu.memory_space<vmem>>, %arg9: memref<32x1xf32, #tpu.memory_space<vmem>>) attributes {dimension_semantics = [#tpu.dimension_semantics<parallel>, #tpu.dimension_semantics<arbitrary>], iteration_bounds = array<i64: 2, 2>, scalar_prefetch = 0 : i64, scratch_operands = 2 : i64, tpu.core_type = #tpu.core_type<tc>, window_params = [{transform_indices = @transform_0, window_bounds = array<i64: 1, 32, 128>}, {pipeline_mode = #tpu.pipeline_mode<synchronous>, transform_indices = @transform_1, window_bounds = array<i64: 32, 32>}, {pipeline_mode = #tpu.pipeline_mode<synchronous>, transform_indices = @transform_2, window_bounds = array<i64: 32, 32>}, {pipeline_mode = #tpu.pipeline_mode<synchronous>, transform_indices = @transform_3, window_bounds = array<i64: 32, 1>}, {pipeline_mode = #tpu.pipeline_mode<synchronous>, transform_indices = @transform_4, window_bounds = array<i64: 32, 1>}, {transform_indices = @transform_5, window_bounds = array<i64: 1, 32, 2>}]} {
    %c0_i32 = arith.constant 0 : i32
    %0 = arith.cmpi eq, %arg1, %c0_i32 : i32
    %1 = arith.extui %0 : i1 to i32
    %c0_i32_0 = arith.constant 0 : i32
    %2 = arith.cmpi ne, %1, %c0_i32_0 : i32
    scf.if %2 {
      %cst_13 = arith.constant 0.000000e+00 : f32
      %19 = vector.broadcast %cst_13 : f32 to vector<32x1xf32>
      %c0_14 = arith.constant 0 : index
      %c0_15 = arith.constant 0 : index
      %20 = vector.load %arg8[%c0_14, %c0_15] : memref<32x1xf32, #tpu.memory_space<vmem>>, vector<32x1xf32>
      tpu.vector_store %arg8[%c0_14, %c0_15], %19 {strides = array<i32>} : memref<32x1xf32, #tpu.memory_space<vmem>>, vector<32x1xf32>,
      %cst_16 = arith.constant 0.000000e+00 : f32
      %21 = vector.broadcast %cst_16 : f32 to vector<32x1xf32>
      %c0_17 = arith.constant 0 : index
      %c0_18 = arith.constant 0 : index
      %22 = vector.load %arg9[%c0_17, %c0_18] : memref<32x1xf32, #tpu.memory_space<vmem>>, vector<32x1xf32>
      tpu.vector_store %arg9[%c0_17, %c0_18], %21 {strides = array<i32>} : memref<32x1xf32, #tpu.memory_space<vmem>>, vector<32x1xf32>,
    } else {
    }
    %c0 = arith.constant 0 : index
    %c0_1 = arith.constant 0 : index
    %c0_2 = arith.constant 0 : index
    %3 = vector.load %arg2[%c0, %c0_1, %c0_2] : memref<1x32x128xf32, #tpu.memory_space<vmem>>, vector<1x32x128xf32>
    %4 = vector.shape_cast %3 : vector<1x32x128xf32> to vector<32x128xf32>
    %c0_3 = arith.constant 0 : index
    %c0_4 = arith.constant 0 : index
    %5 = vector.load %arg8[%c0_3, %c0_4] : memref<32x1xf32, #tpu.memory_space<vmem>>, vector<32x1xf32>
    %cst = arith.constant dense<0.000000e+00> : vector<32xf32>
    %6 = vector.multi_reduction <add>, %4, %cst [1] : vector<32x128xf32> to vector<32xf32>
    %7 = vector.shape_cast %6 : vector<32xf32> to vector<32x1xf32>
    %8 = arith.addf %5, %7 : vector<32x1xf32>
    %c0_5 = arith.constant 0 : index
    %c0_6 = arith.constant 0 : index
    %9 = vector.load %arg8[%c0_5, %c0_6] : memref<32x1xf32, #tpu.memory_space<vmem>>, vector<32x1xf32>
    tpu.vector_store %arg8[%c0_5, %c0_6], %8 {strides = array<i32>} : memref<32x1xf32, #tpu.memory_space<vmem>>, vector<32x1xf32>,
    %c0_7 = arith.constant 0 : index
    %c0_8 = arith.constant 0 : index
    %10 = vector.load %arg9[%c0_7, %c0_8] : memref<32x1xf32, #tpu.memory_space<vmem>>, vector<32x1xf32>
    %11 = arith.mulf %4, %4 : vector<32x128xf32>
    %cst_9 = arith.constant dense<0.000000e+00> : vector<32xf32>
    %12 = vector.multi_reduction <add>, %11, %cst_9 [1] : vector<32x128xf32> to vector<32xf32>
    %13 = vector.shape_cast %12 : vector<32xf32> to vector<32x1xf32>
    %14 = arith.addf %10, %13 : vector<32x1xf32>
    %c0_10 = arith.constant 0 : index
    %c0_11 = arith.constant 0 : index
    %15 = vector.load %arg9[%c0_10, %c0_11] : memref<32x1xf32, #tpu.memory_space<vmem>>, vector<32x1xf32>
    tpu.vector_store %arg9[%c0_10, %c0_11], %14 {strides = array<i32>} : memref<32x1xf32, #tpu.memory_space<vmem>>, vector<32x1xf32>,
    %c1_i32 = arith.constant 1 : i32
    %16 = arith.cmpi eq, %arg1, %c1_i32 : i32
    %17 = arith.extui %16 : i1 to i32
    %c0_i32_12 = arith.constant 0 : i32
    %18 = arith.cmpi ne, %17, %c0_i32_12 : i32
    scf.if %18 {
      %c0_13 = arith.constant 0 : index
      %c0_14 = arith.constant 0 : index
      %19 = vector.load %arg8[%c0_13, %c0_14] : memref<32x1xf32, #tpu.memory_space<vmem>>, vector<32x1xf32>
      %c0_15 = arith.constant 0 : index
      %c0_16 = arith.constant 0 : index
      %20 = vector.load %arg9[%c0_15, %c0_16] : memref<32x1xf32, #tpu.memory_space<vmem>>, vector<32x1xf32>
      %21 = tpu.concatenate %19, %20 in 1 : vector<32x1xf32>, vector<32x1xf32> -> vector<32x2xf32>
      %c0_17 = arith.constant 0 : index
      %c0_18 = arith.constant 0 : index
      %22 = vector.load %arg3[%c0_17, %c0_18] : memref<32x32xf32, #tpu.memory_space<vmem>>, vector<32x32xf32>
      %cst_19 = arith.constant dense<0.000000e+00> : vector<32x2xf32>
      %23 = tpu.matmul %22, %21, %cst_19 {dimension_numbers = #tpu.dot_dimension_numbers<[1], [0], [0], [1], [0, 0, 1, 1], [], []>} : vector<32x32xf32>, vector<32x2xf32>, vector<32x2xf32> -> vector<32x2xf32>
      %c0_20 = arith.constant 0 : index
      %c0_21 = arith.constant 0 : index
      %24 = vector.load %arg4[%c0_20, %c0_21] : memref<32x32xf32, #tpu.memory_space<vmem>>, vector<32x32xf32>
      %cst_22 = arith.constant dense<0.000000e+00> : vector<32x2xf32>
      %25 = tpu.matmul %24, %23, %cst_22 {dimension_numbers = #tpu.dot_dimension_numbers<[1], [0], [0], [1], [0, 0, 1, 1], [], []>} : vector<32x32xf32>, vector<32x2xf32>, vector<32x2xf32> -> vector<32x2xf32>
      %cst_23 = arith.constant 3.906250e-03 : f32
      %26 = vector.broadcast %cst_23 : f32 to vector<32x2xf32>
      %27 = arith.mulf %25, %26 : vector<32x2xf32>
      %28 = vector.extract_strided_slice %27 {offsets = [0, 0], sizes = [32, 1], strides = [1, 1]} : vector<32x2xf32> to vector<32x1xf32>
      %29 = vector.extract_strided_slice %27 {offsets = [0, 1], sizes = [32, 1], strides = [1, 1]} : vector<32x2xf32> to vector<32x1xf32>
      %30 = arith.mulf %28, %28 : vector<32x1xf32>
      %31 = arith.subf %29, %30 : vector<32x1xf32>
      %cst_24 = arith.constant 9.99999997E-7 : f32
      %32 = vector.broadcast %cst_24 : f32 to vector<32x1xf32>
      %33 = arith.addf %31, %32 : vector<32x1xf32>
      %34 = math.rsqrt %33 : vector<32x1xf32>
      %c0_25 = arith.constant 0 : index
      %c0_26 = arith.constant 0 : index
      %35 = vector.load %arg5[%c0_25, %c0_26] : memref<32x1xf32, #tpu.memory_space<vmem>>, vector<32x1xf32>
      %36 = arith.mulf %34, %35 : vector<32x1xf32>
      %c0_27 = arith.constant 0 : index
      %c0_28 = arith.constant 0 : index
      %37 = vector.load %arg6[%c0_27, %c0_28] : memref<32x1xf32, #tpu.memory_space<vmem>>, vector<32x1xf32>
      %38 = arith.mulf %28, %36 : vector<32x1xf32>
      %39 = arith.subf %37, %38 : vector<32x1xf32>
      %40 = tpu.concatenate %36, %39 in 1 : vector<32x1xf32>, vector<32x1xf32> -> vector<32x2xf32>
      %c0_29 = arith.constant 0 : index
      %c0_30 = arith.constant 0 : index
      %c0_31 = arith.constant 0 : index
      %41 = vector.load %arg7[%c0_29, %c0_30, %c0_31] : memref<1x32x2xf32, #tpu.memory_space<vmem>>, vector<1x32x2xf32>
      %42 = vector.shape_cast %41 : vector<1x32x2xf32> to vector<32x2xf32>
      %43 = vector.shape_cast %40 : vector<32x2xf32> to vector<1x32x2xf32>
      tpu.vector_store %arg7[%c0_29, %c0_30, %c0_31], %43 {strides = array<i32>} : memref<1x32x2xf32, #tpu.memory_space<vmem>>, vector<1x32x2xf32>,
    } else {
    }
    return
  }
  func.func @transform_0(%arg0: i32, %arg1: i32) -> (i32, i32, i32) {
    %c0_i32 = arith.constant 0 : i32
    %c0_i32_0 = arith.constant 0 : i32
    return %arg0, %c0_i32, %arg1 : i32, i32, i32
  }
  func.func @transform_1(%arg0: i32, %arg1: i32) -> (i32, i32) {
    %c0_i32 = arith.constant 0 : i32
    %c0_i32_0 = arith.constant 0 : i32
    %c0_i32_1 = arith.constant 0 : i32
    return %c0_i32, %c0_i32_0 : i32, i32
  }
  func.func @transform_2(%arg0: i32, %arg1: i32) -> (i32, i32) {
    %c0_i32 = arith.constant 0 : i32
    %c0_i32_0 = arith.constant 0 : i32
    %c0_i32_1 = arith.constant 0 : i32
    return %c0_i32, %c0_i32_0 : i32, i32
  }
  func.func @transform_3(%arg0: i32, %arg1: i32) -> (i32, i32) {
    %c0_i32 = arith.constant 0 : i32
    %c0_i32_0 = arith.constant 0 : i32
    %c0_i32_1 = arith.constant 0 : i32
    return %c0_i32, %c0_i32_0 : i32, i32
  }
  func.func @transform_4(%arg0: i32, %arg1: i32) -> (i32, i32) {
    %c0_i32 = arith.constant 0 : i32
    %c0_i32_0 = arith.constant 0 : i32
    %c0_i32_1 = arith.constant 0 : i32
    return %c0_i32, %c0_i32_0 : i32, i32
  }
  func.func @transform_5(%arg0: i32, %arg1: i32) -> (i32, i32, i32) {
    %c0_i32 = arith.constant 0 : i32
    %c0_i32_0 = arith.constant 0 : i32
    %c0_i32_1 = arith.constant 0 : i32
    return %arg0, %c0_i32, %c0_i32_0 : i32, i32, i32
  }
}

module attributes {stable_mosaic.version = 11 : i64} {
  func.func @norm_qkv_kernel(%arg0: i32, %arg1: i32, %arg2: memref<1x32x128xf32, #tpu.memory_space<vmem>>, %arg3: memref<1x32x2xf32, #tpu.memory_space<vmem>>, %arg4: memref<96x32xbf16, #tpu.memory_space<vmem>>, %arg5: memref<96x1xf32, #tpu.memory_space<vmem>>, %arg6: memref<1x64x128xbf16, #tpu.memory_space<vmem>>, %arg7: memref<1x128x32xbf16, #tpu.memory_space<vmem>>, %arg8: memref<1x32x128xbf16, #tpu.memory_space<vmem>>) attributes {dimension_semantics = [#tpu.dimension_semantics<parallel>, #tpu.dimension_semantics<parallel>], iteration_bounds = array<i64: 2, 2>, scalar_prefetch = 0 : i64, scratch_operands = 0 : i64, tpu.core_type = #tpu.core_type<tc>, window_params = [{transform_indices = @transform_0, window_bounds = array<i64: 1, 32, 128>}, {transform_indices = @transform_1, window_bounds = array<i64: 1, 32, 2>}, {pipeline_mode = #tpu.pipeline_mode<synchronous>, transform_indices = @transform_2, window_bounds = array<i64: 96, 32>}, {pipeline_mode = #tpu.pipeline_mode<synchronous>, transform_indices = @transform_3, window_bounds = array<i64: 96, 1>}, {transform_indices = @transform_4, window_bounds = array<i64: 1, 64, 128>}, {transform_indices = @transform_5, window_bounds = array<i64: 1, 128, 32>}, {transform_indices = @transform_6, window_bounds = array<i64: 1, 32, 128>}]} {
    %c0 = arith.constant 0 : index
    %c0_0 = arith.constant 0 : index
    %c0_1 = arith.constant 0 : index
    %0 = vector.load %arg2[%c0, %c0_0, %c0_1] : memref<1x32x128xf32, #tpu.memory_space<vmem>>, vector<1x32x128xf32>
    %1 = vector.shape_cast %0 : vector<1x32x128xf32> to vector<32x128xf32>
    %c0_2 = arith.constant 0 : index
    %c0_3 = arith.constant 0 : index
    %c0_4 = arith.constant 0 : index
    %2 = vector.load %arg3[%c0_2, %c0_3, %c0_4] : memref<1x32x2xf32, #tpu.memory_space<vmem>>, vector<1x32x1xf32>
    %3 = vector.shape_cast %2 : vector<1x32x1xf32> to vector<32x1xf32>
    %4 = vector.broadcast %3 : vector<32x1xf32> to vector<32x128xf32>
    %5 = arith.mulf %1, %4 : vector<32x128xf32>
    %c0_5 = arith.constant 0 : index
    %c0_6 = arith.constant 0 : index
    %c1 = arith.constant 1 : index
    %6 = vector.load %arg3[%c0_5, %c0_6, %c1] : memref<1x32x2xf32, #tpu.memory_space<vmem>>, vector<1x32x1xf32>
    %7 = vector.shape_cast %6 : vector<1x32x1xf32> to vector<32x1xf32>
    %8 = vector.broadcast %7 : vector<32x1xf32> to vector<32x128xf32>
    %9 = arith.addf %5, %8 : vector<32x128xf32>
    %10 = arith.truncf %9 : vector<32x128xf32> to vector<32x128xbf16>
    %c0_7 = arith.constant 0 : index
    %c0_8 = arith.constant 0 : index
    %11 = vector.load %arg4[%c0_7, %c0_8] : memref<96x32xbf16, #tpu.memory_space<vmem>>, vector<96x32xbf16>
    %cst = arith.constant dense<0.000000e+00> : vector<96x128xf32>
    %12 = tpu.matmul %11, %10, %cst {dimension_numbers = #tpu.dot_dimension_numbers<[1], [0], [0], [1], [0, 0, 1, 1], [], []>} : vector<96x32xbf16>, vector<32x128xbf16>, vector<96x128xf32> -> vector<96x128xf32>
    %c0_9 = arith.constant 0 : index
    %c0_10 = arith.constant 0 : index
    %13 = vector.load %arg5[%c0_9, %c0_10] : memref<96x1xf32, #tpu.memory_space<vmem>>, vector<96x1xf32>
    %14 = vector.broadcast %13 : vector<96x1xf32> to vector<96x128xf32>
    %15 = arith.addf %12, %14 : vector<96x128xf32>
    %16 = vector.extract_strided_slice %15 {offsets = [0, 0], sizes = [32, 128], strides = [1, 1]} : vector<96x128xf32> to vector<32x128xf32>
    %cst_11 = arith.constant 0.255034864 : f32
    %17 = vector.broadcast %cst_11 : f32 to vector<32x128xf32>
    %18 = arith.mulf %16, %17 : vector<32x128xf32>
    %19 = arith.truncf %18 : vector<32x128xf32> to vector<32x128xbf16>
    %20 = vector.extract_strided_slice %15 {offsets = [64, 0], sizes = [32, 128], strides = [1, 1]} : vector<96x128xf32> to vector<32x128xf32>
    %21 = arith.truncf %20 : vector<32x128xf32> to vector<32x128xbf16>
    %22 = tpu.concatenate %19, %21 in 0 : vector<32x128xbf16>, vector<32x128xbf16> -> vector<64x128xbf16>
    %c0_12 = arith.constant 0 : index
    %c0_13 = arith.constant 0 : index
    %c0_14 = arith.constant 0 : index
    %23 = vector.load %arg6[%c0_12, %c0_13, %c0_14] : memref<1x64x128xbf16, #tpu.memory_space<vmem>>, vector<1x64x128xbf16>
    %24 = vector.shape_cast %23 : vector<1x64x128xbf16> to vector<64x128xbf16>
    %25 = vector.shape_cast %22 : vector<64x128xbf16> to vector<1x64x128xbf16>
    tpu.vector_store %arg6[%c0_12, %c0_13, %c0_14], %25 {strides = array<i32>} : memref<1x64x128xbf16, #tpu.memory_space<vmem>>, vector<1x64x128xbf16>,
    %26 = vector.extract_strided_slice %15 {offsets = [32, 0], sizes = [32, 128], strides = [1, 1]} : vector<96x128xf32> to vector<32x128xf32>
    %27 = tpu.transpose %26, [1, 0] : vector<32x128xf32> -> vector<128x32xf32>
    %28 = arith.truncf %27 : vector<128x32xf32> to vector<128x32xbf16>
    %c0_15 = arith.constant 0 : index
    %c0_16 = arith.constant 0 : index
    %c0_17 = arith.constant 0 : index
    %29 = vector.load %arg7[%c0_15, %c0_16, %c0_17] : memref<1x128x32xbf16, #tpu.memory_space<vmem>>, vector<1x128x32xbf16>
    %30 = vector.shape_cast %29 : vector<1x128x32xbf16> to vector<128x32xbf16>
    %31 = vector.shape_cast %28 : vector<128x32xbf16> to vector<1x128x32xbf16>
    tpu.vector_store %arg7[%c0_15, %c0_16, %c0_17], %31 {strides = array<i32>} : memref<1x128x32xbf16, #tpu.memory_space<vmem>>, vector<1x128x32xbf16>,
    %c0_18 = arith.constant 0 : index
    %c0_19 = arith.constant 0 : index
    %c0_20 = arith.constant 0 : index
    %32 = vector.load %arg8[%c0_18, %c0_19, %c0_20] : memref<1x32x128xbf16, #tpu.memory_space<vmem>>, vector<1x32x128xbf16>
    %33 = vector.shape_cast %32 : vector<1x32x128xbf16> to vector<32x128xbf16>
    %34 = vector.shape_cast %10 : vector<32x128xbf16> to vector<1x32x128xbf16>
    tpu.vector_store %arg8[%c0_18, %c0_19, %c0_20], %34 {strides = array<i32>} : memref<1x32x128xbf16, #tpu.memory_space<vmem>>, vector<1x32x128xbf16>,
    return
  }
  func.func @transform_0(%arg0: i32, %arg1: i32) -> (i32, i32, i32) {
    %c0_i32 = arith.constant 0 : i32
    %c0_i32_0 = arith.constant 0 : i32
    return %arg0, %c0_i32, %arg1 : i32, i32, i32
  }
  func.func @transform_1(%arg0: i32, %arg1: i32) -> (i32, i32, i32) {
    %c0_i32 = arith.constant 0 : i32
    %c0_i32_0 = arith.constant 0 : i32
    %c0_i32_1 = arith.constant 0 : i32
    return %arg0, %c0_i32, %c0_i32_0 : i32, i32, i32
  }
  func.func @transform_2(%arg0: i32, %arg1: i32) -> (i32, i32) {
    %c0_i32 = arith.constant 0 : i32
    %c0_i32_0 = arith.constant 0 : i32
    %c0_i32_1 = arith.constant 0 : i32
    return %c0_i32, %c0_i32_0 : i32, i32
  }
  func.func @transform_3(%arg0: i32, %arg1: i32) -> (i32, i32) {
    %c0_i32 = arith.constant 0 : i32
    %c0_i32_0 = arith.constant 0 : i32
    %c0_i32_1 = arith.constant 0 : i32
    return %c0_i32, %c0_i32_0 : i32, i32
  }
  func.func @transform_4(%arg0: i32, %arg1: i32) -> (i32, i32, i32) {
    %c0_i32 = arith.constant 0 : i32
    %c0_i32_0 = arith.constant 0 : i32
    return %arg0, %c0_i32, %arg1 : i32, i32, i32
  }
  func.func @transform_5(%arg0: i32, %arg1: i32) -> (i32, i32, i32) {
    %c0_i32 = arith.constant 0 : i32
    %c0_i32_0 = arith.constant 0 : i32
    return %arg0, %arg1, %c0_i32 : i32, i32, i32
  }
  func.func @transform_6(%arg0: i32, %arg1: i32) -> (i32, i32, i32) {
    %c0_i32 = arith.constant 0 : i32
    %c0_i32_0 = arith.constant 0 : i32
    return %arg0, %c0_i32, %arg1 : i32, i32, i32
  }
}

module attributes {stable_mosaic.version = 11 : i64} {
  func.func @flash_attn_kernel(%arg0: i32, %arg1: i32, %arg2: i32, %arg3: memref<1x32x128xbf16, #tpu.memory_space<vmem>>, %arg4: memref<1x32x128xbf16, #tpu.memory_space<vmem>>, %arg5: memref<1x256x32xbf16, #tpu.memory_space<vmem>>, %arg6: memref<1x32x256xbf16, #tpu.memory_space<vmem>>, %arg7: memref<32x32xbf16, #tpu.memory_space<vmem>>, %arg8: memref<32x1xf32, #tpu.memory_space<vmem>>, %arg9: memref<1x32x128xf32, #tpu.memory_space<vmem>>, %arg10: memref<1x128xf32, #tpu.memory_space<vmem>>, %arg11: memref<1x128xf32, #tpu.memory_space<vmem>>, %arg12: memref<32x128xf32, #tpu.memory_space<vmem>>) attributes {dimension_semantics = [#tpu.dimension_semantics<parallel>, #tpu.dimension_semantics<parallel>, #tpu.dimension_semantics<arbitrary>], iteration_bounds = array<i64: 2, 2, 2>, scalar_prefetch = 0 : i64, scratch_operands = 3 : i64, tpu.core_type = #tpu.core_type<tc>, window_params = [{transform_indices = @transform_0, window_bounds = array<i64: 1, 32, 128>}, {transform_indices = @transform_1, window_bounds = array<i64: 1, 32, 128>}, {transform_indices = @transform_2, window_bounds = array<i64: 1, 256, 32>}, {transform_indices = @transform_3, window_bounds = array<i64: 1, 32, 256>}, {pipeline_mode = #tpu.pipeline_mode<synchronous>, transform_indices = @transform_4, window_bounds = array<i64: 32, 32>}, {pipeline_mode = #tpu.pipeline_mode<synchronous>, transform_indices = @transform_5, window_bounds = array<i64: 32, 1>}, {transform_indices = @transform_6, window_bounds = array<i64: 1, 32, 128>}]} {
    %c0_i32 = arith.constant 0 : i32
    %0 = arith.cmpi eq, %arg2, %c0_i32 : i32
    %1 = arith.extui %0 : i1 to i32
    %c0_i32_0 = arith.constant 0 : i32
    %2 = arith.cmpi ne, %1, %c0_i32_0 : i32
    scf.if %2 {
      %cst_23 = arith.constant 0xFF800000 : f32
      %40 = vector.broadcast %cst_23 : f32 to vector<1x128xf32>
      %c0_24 = arith.constant 0 : index
      %c0_25 = arith.constant 0 : index
      %41 = vector.load %arg10[%c0_24, %c0_25] : memref<1x128xf32, #tpu.memory_space<vmem>>, vector<1x128xf32>
      tpu.vector_store %arg10[%c0_24, %c0_25], %40 {strides = array<i32>} : memref<1x128xf32, #tpu.memory_space<vmem>>, vector<1x128xf32>,
      %cst_26 = arith.constant 0.000000e+00 : f32
      %42 = vector.broadcast %cst_26 : f32 to vector<1x128xf32>
      %c0_27 = arith.constant 0 : index
      %c0_28 = arith.constant 0 : index
      %43 = vector.load %arg11[%c0_27, %c0_28] : memref<1x128xf32, #tpu.memory_space<vmem>>, vector<1x128xf32>
      tpu.vector_store %arg11[%c0_27, %c0_28], %42 {strides = array<i32>} : memref<1x128xf32, #tpu.memory_space<vmem>>, vector<1x128xf32>,
      %cst_29 = arith.constant 0.000000e+00 : f32
      %44 = vector.broadcast %cst_29 : f32 to vector<32x128xf32>
      %c0_30 = arith.constant 0 : index
      %c0_31 = arith.constant 0 : index
      %45 = vector.load %arg12[%c0_30, %c0_31] : memref<32x128xf32, #tpu.memory_space<vmem>>, vector<32x128xf32>
      tpu.vector_store %arg12[%c0_30, %c0_31], %44 {strides = array<i32>} : memref<32x128xf32, #tpu.memory_space<vmem>>, vector<32x128xf32>,
    } else {
    }
    %c0 = arith.constant 0 : index
    %c0_1 = arith.constant 0 : index
    %c0_2 = arith.constant 0 : index
    %3 = vector.load %arg4[%c0, %c0_1, %c0_2] : memref<1x32x128xbf16, #tpu.memory_space<vmem>>, vector<1x32x128xbf16>
    %4 = vector.shape_cast %3 : vector<1x32x128xbf16> to vector<32x128xbf16>
    %c128_i32 = arith.constant 128 : i32
    %5 = arith.muli %arg2, %c128_i32 : i32
    %6 = tpu.assume_multiple %5, 128 : i32
    %c0_3 = arith.constant 0 : index
    %7 = arith.index_cast %6 : i32 to index
    %c0_4 = arith.constant 0 : index
    %8 = vector.load %arg5[%c0_3, %7, %c0_4] : memref<1x256x32xbf16, #tpu.memory_space<vmem>>, vector<1x128x32xbf16>
    %9 = vector.shape_cast %8 : vector<1x128x32xbf16> to vector<128x32xbf16>
    %c0_5 = arith.constant 0 : index
    %c0_6 = arith.constant 0 : index
    %10 = arith.index_cast %6 : i32 to index
    %11 = vector.load %arg6[%c0_5, %c0_6, %10] : memref<1x32x256xbf16, #tpu.memory_space<vmem>>, vector<1x32x128xbf16>
    %12 = vector.shape_cast %11 : vector<1x32x128xbf16> to vector<32x128xbf16>
    %cst = arith.constant dense<0.000000e+00> : vector<128x128xf32>
    %13 = tpu.matmul %9, %4, %cst {dimension_numbers = #tpu.dot_dimension_numbers<[1], [0], [0], [1], [0, 0, 1, 1], [], []>} : vector<128x32xbf16>, vector<32x128xbf16>, vector<128x128xf32> -> vector<128x128xf32>
    %c0_7 = arith.constant 0 : index
    %c0_8 = arith.constant 0 : index
    %14 = vector.load %arg10[%c0_7, %c0_8] : memref<1x128xf32, #tpu.memory_space<vmem>>, vector<1x128xf32>
    %cst_9 = arith.constant dense<0xFF800000> : vector<128xf32>
    %15 = vector.multi_reduction <maximumf>, %13, %cst_9 [0] : vector<128x128xf32> to vector<128xf32>
    %16 = vector.shape_cast %15 : vector<128xf32> to vector<1x128xf32>
    %17 = arith.maximumf %14, %16 : vector<1x128xf32>
    %18 = arith.subf %14, %17 : vector<1x128xf32>
    %19 = math.exp2 %18 : vector<1x128xf32>
    %20 = vector.broadcast %17 : vector<1x128xf32> to vector<128x128xf32>
    %21 = arith.subf %13, %20 : vector<128x128xf32>
    %22 = math.exp2 %21 : vector<128x128xf32>
    %c0_10 = arith.constant 0 : index
    %c0_11 = arith.constant 0 : index
    %23 = vector.load %arg11[%c0_10, %c0_11] : memref<1x128xf32, #tpu.memory_space<vmem>>, vector<1x128xf32>
    %24 = arith.mulf %19, %23 : vector<1x128xf32>
    %cst_12 = arith.constant dense<0.000000e+00> : vector<128xf32>
    %25 = vector.multi_reduction <add>, %22, %cst_12 [0] : vector<128x128xf32> to vector<128xf32>
    %26 = vector.shape_cast %25 : vector<128xf32> to vector<1x128xf32>
    %27 = arith.addf %24, %26 : vector<1x128xf32>
    %c0_13 = arith.constant 0 : index
    %c0_14 = arith.constant 0 : index
    %28 = vector.load %arg11[%c0_13, %c0_14] : memref<1x128xf32, #tpu.memory_space<vmem>>, vector<1x128xf32>
    tpu.vector_store %arg11[%c0_13, %c0_14], %27 {strides = array<i32>} : memref<1x128xf32, #tpu.memory_space<vmem>>, vector<1x128xf32>,
    %c0_15 = arith.constant 0 : index
    %c0_16 = arith.constant 0 : index
    %29 = vector.load %arg12[%c0_15, %c0_16] : memref<32x128xf32, #tpu.memory_space<vmem>>, vector<32x128xf32>
    %30 = vector.broadcast %19 : vector<1x128xf32> to vector<32x128xf32>
    %31 = arith.mulf %30, %29 : vector<32x128xf32>
    %32 = arith.truncf %22 : vector<128x128xf32> to vector<128x128xbf16>
    %cst_17 = arith.constant dense<0.000000e+00> : vector<32x128xf32>
    %33 = tpu.matmul %12, %32, %cst_17 {dimension_numbers = #tpu.dot_dimension_numbers<[1], [0], [0], [1], [0, 0, 1, 1], [], []>} : vector<32x128xbf16>, vector<128x128xbf16>, vector<32x128xf32> -> vector<32x128xf32>
    %34 = arith.addf %31, %33 : vector<32x128xf32>
    %c0_18 = arith.constant 0 : index
    %c0_19 = arith.constant 0 : index
    %35 = vector.load %arg12[%c0_18, %c0_19] : memref<32x128xf32, #tpu.memory_space<vmem>>, vector<32x128xf32>
    tpu.vector_store %arg12[%c0_18, %c0_19], %34 {strides = array<i32>} : memref<32x128xf32, #tpu.memory_space<vmem>>, vector<32x128xf32>,
    %c0_20 = arith.constant 0 : index
    %c0_21 = arith.constant 0 : index
    %36 = vector.load %arg10[%c0_20, %c0_21] : memref<1x128xf32, #tpu.memory_space<vmem>>, vector<1x128xf32>
    tpu.vector_store %arg10[%c0_20, %c0_21], %17 {strides = array<i32>} : memref<1x128xf32, #tpu.memory_space<vmem>>, vector<1x128xf32>,
    %c1_i32 = arith.constant 1 : i32
    %37 = arith.cmpi eq, %arg2, %c1_i32 : i32
    %38 = arith.extui %37 : i1 to i32
    %c0_i32_22 = arith.constant 0 : i32
    %39 = arith.cmpi ne, %38, %c0_i32_22 : i32
    scf.if %39 {
      %c0_23 = arith.constant 0 : index
      %c0_24 = arith.constant 0 : index
      %40 = vector.load %arg11[%c0_23, %c0_24] : memref<1x128xf32, #tpu.memory_space<vmem>>, vector<1x128xf32>
      %41 = tpu.reciprocal %40 {approx = true} : vector<1x128xf32> -> vector<1x128xf32>
      %c0_25 = arith.constant 0 : index
      %c0_26 = arith.constant 0 : index
      %42 = vector.load %arg12[%c0_25, %c0_26] : memref<32x128xf32, #tpu.memory_space<vmem>>, vector<32x128xf32>
      %43 = vector.broadcast %41 : vector<1x128xf32> to vector<32x128xf32>
      %44 = arith.mulf %42, %43 : vector<32x128xf32>
      %c0_27 = arith.constant 0 : index
      %c0_28 = arith.constant 0 : index
      %45 = vector.load %arg7[%c0_27, %c0_28] : memref<32x32xbf16, #tpu.memory_space<vmem>>, vector<32x32xbf16>
      %46 = arith.truncf %44 : vector<32x128xf32> to vector<32x128xbf16>
      %cst_29 = arith.constant dense<0.000000e+00> : vector<32x128xf32>
      %47 = tpu.matmul %45, %46, %cst_29 {dimension_numbers = #tpu.dot_dimension_numbers<[1], [0], [0], [1], [0, 0, 1, 1], [], []>} : vector<32x32xbf16>, vector<32x128xbf16>, vector<32x128xf32> -> vector<32x128xf32>
      %c0_30 = arith.constant 0 : index
      %c0_31 = arith.constant 0 : index
      %48 = vector.load %arg8[%c0_30, %c0_31] : memref<32x1xf32, #tpu.memory_space<vmem>>, vector<32x1xf32>
      %49 = vector.broadcast %48 : vector<32x1xf32> to vector<32x128xf32>
      %50 = arith.addf %47, %49 : vector<32x128xf32>
      %c0_32 = arith.constant 0 : index
      %c0_33 = arith.constant 0 : index
      %c0_34 = arith.constant 0 : index
      %51 = vector.load %arg3[%c0_32, %c0_33, %c0_34] : memref<1x32x128xbf16, #tpu.memory_space<vmem>>, vector<1x32x128xbf16>
      %52 = vector.shape_cast %51 : vector<1x32x128xbf16> to vector<32x128xbf16>
      %53 = arith.extf %52 : vector<32x128xbf16> to vector<32x128xf32>
      %54 = arith.addf %53, %50 : vector<32x128xf32>
      %c0_35 = arith.constant 0 : index
      %c0_36 = arith.constant 0 : index
      %c0_37 = arith.constant 0 : index
      %55 = vector.load %arg9[%c0_35, %c0_36, %c0_37] : memref<1x32x128xf32, #tpu.memory_space<vmem>>, vector<1x32x128xf32>
      %56 = vector.shape_cast %55 : vector<1x32x128xf32> to vector<32x128xf32>
      %57 = vector.shape_cast %54 : vector<32x128xf32> to vector<1x32x128xf32>
      tpu.vector_store %arg9[%c0_35, %c0_36, %c0_37], %57 {strides = array<i32>} : memref<1x32x128xf32, #tpu.memory_space<vmem>>, vector<1x32x128xf32>,
    } else {
    }
    return
  }
  func.func @transform_0(%arg0: i32, %arg1: i32, %arg2: i32) -> (i32, i32, i32) {
    %c0_i32 = arith.constant 0 : i32
    %c0_i32_0 = arith.constant 0 : i32
    return %arg0, %c0_i32, %arg1 : i32, i32, i32
  }
  func.func @transform_1(%arg0: i32, %arg1: i32, %arg2: i32) -> (i32, i32, i32) {
    %c0_i32 = arith.constant 0 : i32
    %c0_i32_0 = arith.constant 0 : i32
    return %arg0, %c0_i32, %arg1 : i32, i32, i32
  }
  func.func @transform_2(%arg0: i32, %arg1: i32, %arg2: i32) -> (i32, i32, i32) {
    %c0_i32 = arith.constant 0 : i32
    %c0_i32_0 = arith.constant 0 : i32
    %c0_i32_1 = arith.constant 0 : i32
    return %arg0, %c0_i32, %c0_i32_0 : i32, i32, i32
  }
  func.func @transform_3(%arg0: i32, %arg1: i32, %arg2: i32) -> (i32, i32, i32) {
    %c1_i32 = arith.constant 1 : i32
    %c0_i32 = arith.constant 0 : i32
    %c0_i32_0 = arith.constant 0 : i32
    return %arg0, %c1_i32, %c0_i32 : i32, i32, i32
  }
  func.func @transform_4(%arg0: i32, %arg1: i32, %arg2: i32) -> (i32, i32) {
    %c0_i32 = arith.constant 0 : i32
    %c0_i32_0 = arith.constant 0 : i32
    %c0_i32_1 = arith.constant 0 : i32
    return %c0_i32, %c0_i32_0 : i32, i32
  }
  func.func @transform_5(%arg0: i32, %arg1: i32, %arg2: i32) -> (i32, i32) {
    %c0_i32 = arith.constant 0 : i32
    %c0_i32_0 = arith.constant 0 : i32
    %c0_i32_1 = arith.constant 0 : i32
    return %c0_i32, %c0_i32_0 : i32, i32
  }
  func.func @transform_6(%arg0: i32, %arg1: i32, %arg2: i32) -> (i32, i32, i32) {
    %c0_i32 = arith.constant 0 : i32
    %c0_i32_0 = arith.constant 0 : i32
    return %arg0, %c0_i32, %arg1 : i32, i32, i32
  }
}

</mosaic_0001>

<bundles_post_ra>
// kernel: nonlocal_block.3
= control target key start
LH: loop header
LB: loop body
LE: loop exit
PB: predicated region body
PF: predicated region fallthrough
CT: control target
= control target key end

     0   :  { %s1021_s18 = smov 0   ;;  %s1023_s19 = smov 0   ;;  %s1210_s0 = inlined_call_operand.vmem [shape: f32[2,32,256], index: 0, kind: input, shape index: {}]   ;;  %s1211_s1 = inlined_call_operand.vmem [shape: f32[32,32], index: 1, kind: input, shape index: {}]   ;;  %s1212_s2 = inlined_call_operand.vmem [shape: f32[32,32], index: 2, kind: input, shape index: {}]   ;;  %s1213_s3 = inlined_call_operand.vmem [shape: f32[32,1], index: 3, kind: input, shape index: {}]   ;;  %s1214_s4 = inlined_call_operand.vmem [shape: f32[32,1], index: 4, kind: input, shape index: {}]   ;;  %s1215_s5 = inlined_call_operand.vmem [shape: f32[2,32,2], index: 5, kind: output, shape index: {}]  }
   0x1   :  { %s1025_s20 = smov 0   ;;  %s1027_s21 = smov 0  }
   0x2   :  { %s1029_s22 = smov 0   ;;  %s1031_s23 = smov 0  }
   0x3   :  { %s1033_s24 = smov 0  }
   0x4 LB: > { %s24_s25 = sadd.s32 1, %s978_s22  ;;  %s27_s26 = sadd.s32 1, %s982_s23  ;;  %s986_s24 = sphi %s1033_s24, %s15_s24   ;;  %s982_s23 = sphi %s1031_s23, %s1221_s23   ;;  %s978_s22 = sphi %s1029_s22, %s1220_s22   ;;  %s974_s21 = sphi %s1027_s21, %s1219_s21   ;;  %s970_s20 = sphi %s1025_s20, %s1218_s20   ;;  %s966_s19 = sphi %s1023_s19, %s1217_s19   ;;  %s962_s18 = sphi %s1021_s18, %s1216_s18  }
   0x5   : > { %p25_p0 = scmp.ge.s32.totalorder %s24_s25, 2  ;;  %p43_p1 = scmp.ne.s32.totalorder %s966_s19, %s962_s18 }
   0x6   : > { %p44_p2 = scmp.eq.s32.totalorder %s986_s24, 0  ;;  %s36_s30 = sadd.s32 1, %s966_s19 }
   0x7   : > { %s1223_s25 = smov (%p25_p0, %s24_s25), 0  ;;  %s1225_s26 = smov (!%p25_p0, %s27_s26), %s982_s23 }
   0x8   : > { %p45_p3 = por %p44_p2, %p43_p1  ;;  %p29_p4 = scmp.ge.s32.totalorder %s1225_s26, 2 }
   0x9   : > { %s32_s27 = ssub.s32 %s978_s22, %s1223_s25  ;;  %p774_p6 = scmp.ge.s32.totalorder %s986_s24, 4 }
   0xa   : > { %s1227_s26 = smov (%p29_p4, %s1225_s26), 0 }
   0xb   : > { %s31_s28 = ssub.s32 %s982_s23, %s1227_s26  ;;  %191 = sbr.rel (%p774_p6) target bundleno = 26 (0x1a), region = 32 }
   0xc   : > { %s33_s29 = sor.u32 %s32_s27, %s31_s28 }
   0xd   : > { %p34_p5 = scmp.eq.s32.totalorder %s33_s29, 0 }
   0xf   : > { %s1072_s6 = scalar_select %p34_p5, %s966_s19, %s36_s30  }
  0x12   : > { %194 = sbr.rel (!%p45_p3) target bundleno = 26 (0x1a), region = 36  ;;  %s196_s7 = sand.u32 (%p45_p3), 1, %s966_s19  }
  0x13   : > { %s776_s8 = sshll.u32 (%p45_p3), %s982_s23, 3  ;;  %s775_s9 = sshll.u32 (%p45_p3), %s196_s7, 5 }
  0x14   : > { %s200_s10 = sadd.s32 (%p45_p3), %s978_s22, %s776_s8  ;;  %s198_s15 = scalar_lea.vmem (%p45_p3), [#allocation4], %s775_s9 }
  0x15   : > { %s777_s11 = sshll.u32 (%p45_p3), %s200_s10, 3 }
  0x16   : > { %s202_s14 = scalar_lea.vmem (%p45_p3), %s1210_s0, %s777_s11 }
  0x17   : > { %v236_v0 = vld [vmem:[%s202_s14] sm:$0xff] (%p45_p3)  ;;  %v238_v1 = vld [vmem:[%s202_s14 + $0x10] sm:$0xff] (%p45_p3) }
  0x18   : > { %v240_v2 = vld [vmem:[%s202_s14 + $0x20] sm:$0xff] (%p45_p3)  ;;  %237 = vst [vmem:[%s198_s15] sm:$0xff] (%p45_p3), %v236_v0  ;;  %239 = vst [vmem:[%s198_s15 + $0x8] sm:$0xff] (%p45_p3), %v238_v1  ;;  %v242_v3 = vld [vmem:[%s202_s14 + $0x30] sm:$0xff] (%p45_p3) }
  0x19   : > { %241 = vst [vmem:[%s198_s15 + $0x10] sm:$0xff] %v240_v2  ;;  %243 = vst [vmem:[%s198_s15 + $0x18] sm:$0xff] %v242_v3 }
  0x1a PF: > { %p778_p7 = scmp.ge.s32.totalorder %s986_s24, 1  ;;  %p248_p8 = scmp.lt.s32.totalorder %s986_s24, 5 }
  0x1c   : > { %p249_p9 = pnand %p778_p7, %p248_p8 }
  0x1d   : > { %s255_s16 = sand.u32 (!%p249_p9), 1, %s962_s18   ;;  %p282_p10 = scmp.lt.s32.totalorder (!%p249_p9), %s974_s21, 1 }
  0x1e   : > { %252 = sbr.rel (%p249_p9) target bundleno = 1150 (0x47e), region = 74  ;;  %s779_s17 = sshll.u32 (!%p249_p9), %s255_s16, 5 }
  0x1f   : > { %s257_s7 = scalar_lea.vmem (!%p249_p9), [#allocation4], %s779_s17  ;;  %p782_p11 = scmp.ne.s32.totalorder (!%p249_p9), %s970_s20, 0 }
  0x25   : > { %s1229_s21 = smov (!%p282_p10, %s974_s21), 1  ;;  %290 = sbr.rel (%p782_p11) target bundleno = 44 (0x2c), region = 82 }
  0x26   : > { %s794_s27 = sshll.u32 %s1229_s21, 5  ;;  %vm291_vm0 = vcmask (!%p782_p11), 7168   ;;  %v988_v4 = vmov (!%p782_p11), 0.0  }
  0x27   : > { %s1089_s30 = scalar_lea.vmem %s1215_s5, %s794_s27  ;;  %292 = vst.msk [vmem:[#allocation2] sm:$0xff] (!%p782_p11), %vm291_vm0, %v988_v4  ;;  %293 = vst.msk [vmem:[#allocation2 + $0x8] sm:$0xff] (!%p782_p11), %vm291_vm0, %v988_v4 }
  0x28   : > { %294 = vst.msk [vmem:[#allocation2 + $0x10] sm:$0xff] (!%p782_p11), %vm291_vm0, %v988_v4  ;;  %295 = vst.msk [vmem:[#allocation2 + $0x18] sm:$0xff] (!%p782_p11), %vm291_vm0, %v988_v4 }
  0x29   : > { %296 = vst.msk [vmem:[#allocation3] sm:$0xff] (!%p782_p11), %vm291_vm0, %v988_v4  ;;  %297 = vst.msk [vmem:[#allocation3 + $0x8] sm:$0xff] (!%p782_p11), %vm291_vm0, %v988_v4 }
  0x2a   : > { %298 = vst.msk [vmem:[#allocation3 + $0x10] sm:$0xff] (!%p782_p11), %vm291_vm0, %v988_v4  ;;  %299 = vst.msk [vmem:[#allocation3 + $0x18] sm:$0xff] (!%p782_p11), %vm291_vm0, %v988_v4 }
  0x2c PF: > { %v302_v5 = vld [vmem:[%s257_s7 + $0x10] sm:$0xff]  ;;  %v300_v6 = vld [vmem:[%s257_s7] sm:$0xff]  ;;  %v303_v7 = vld [vmem:[%s257_s7 + $0x18] sm:$0xff]  ;;  %vm320_vm1 = vcmask 7168   ;;  %p783_p12 = scmp.ne.s32.totalorder %s970_s20, 1 }
  0x2d   : > { %312 = vadd.xlane.f32.xlu1 %v302_v5  ;;  %308 = vadd.xlane.f32.xlu0 %v300_v6  ;;  %v301_v8 = vld [vmem:[%s257_s7 + $0x8] sm:$0xff]  ;;  %v329_v10 = vmul.f32 %v300_v6, %v300_v6  ;;  %v332_v11 = vmul.f32 %v303_v7, %v303_v7  ;;  %v331_v12 = vmul.f32 %v302_v5, %v302_v5  ;;  %vm385_vm2 = vcmask (!%p783_p12), 261120   ;;  %v381_v42 = vld [vmem:[%s1211_s1] sm:$0xff] (!%p783_p12)  ;;  %s989_s8 = smov (!%p783_p12), 1   ;;  %v383_v61 = vld [vmem:[%s1211_s1 + $0x10] sm:$0xff] (!%p783_p12)  ;;  %s990_s14 = smov (!%p783_p12), 127  }
  0x2e   : > { %v330_v9 = vmul.f32 %v301_v8, %v301_v8  ;;  %v304_v14 = vld [vmem:[#allocation2] sm:$0xff]  ;;  %v305_v20 = vld [vmem:[#allocation2 + $0x8] sm:$0xff]  ;;  %819 = vmatprep.mubr.msk.f32.mxu0 (!%p783_p12), %vm385_vm2, %v381_v42  ;;  %v384_v62 = vld [vmem:[%s1211_s1 + $0x18] sm:$0xff] (!%p783_p12)  ;;  %vm692_vm3 = vcmask (!%p783_p12), 15360  }
  0x2f   : > { %v306_v13 = vld [vmem:[#allocation2 + $0x10] sm:$0xff]  ;;  %v307_v19 = vld [vmem:[#allocation2 + $0x18] sm:$0xff]  ;;  %v382_v60 = vld [vmem:[%s1211_s1 + $0x8] sm:$0xff] (!%p783_p12) }
  0x30   : > { %v326_v25 = vld [vmem:[#allocation3 + $0x8] sm:$0xff]  ;;  %v325_v26 = vld [vmem:[#allocation3] sm:$0xff] }
  0x31   : > { %314 = vadd.xlane.f32.xlu1 %v303_v7  ;;  %310 = vadd.xlane.f32.xlu0 %v301_v8  ;;  %v328_v31 = vld [vmem:[#allocation3 + $0x18] sm:$0xff]  ;;  %v327_v32 = vld [vmem:[#allocation3 + $0x10] sm:$0xff]  ;;  %v483_v63 = vld [vmem:[%s1212_s2] sm:$0xff] (!%p783_p12) }
  0x32   : > { %833 = vmatprep.mubr.msk.f32.mxu1 (!%p783_p12), %vm385_vm2, %v483_v63  ;;  %v484_v6 = vld [vmem:[%s1212_s2 + $0x8] sm:$0xff] (!%p783_p12)  ;;  %v485_v7 = vld [vmem:[%s1212_s2 + $0x10] sm:$0xff] (!%p783_p12)  ;;  %v486_v8 = vld [vmem:[%s1212_s2 + $0x18] sm:$0xff] (!%p783_p12) }
  0x35   : > { %335 = vadd.xlane.f32.xlu1 %v330_v9  ;;  %333 = vadd.xlane.f32.xlu0 %v329_v10 }
  0x39   : > { %339 = vadd.xlane.f32.xlu1 %v332_v11  ;;  %337 = vadd.xlane.f32.xlu0 %v331_v12 }
  0xba   : > { %v313_v15 = vpop.xlane.xlu1 %312  ;;  %v309_v16 = vpop.xlane.xlu0 %308 }
  0xbb   : > { %v318_v17 = vadd.f32 %v313_v15, %v306_v13  ;;  %v316_v18 = vadd.f32 %v309_v16, %v304_v14 }
  0xbd   : > { %323 = vst.msk [vmem:[#allocation2 + $0x10] sm:$0xff] %vm320_vm1, %v318_v17  ;;  %321 = vst.msk [vmem:[#allocation2] sm:$0xff] %vm320_vm1, %v316_v18 }
  0xbe   : > { %v315_v21 = vpop.xlane.xlu1 %314  ;;  %v311_v22 = vpop.xlane.xlu0 %310 }
  0xbf   : > { %v319_v23 = vadd.f32 %v315_v21, %v307_v19  ;;  %v317_v24 = vadd.f32 %v311_v22, %v305_v20  ;;  %v620_v21 = vld [vmem:[%s1213_s3] sm:$0xff] (!%p783_p12)  ;;  %v621_v22 = vld [vmem:[%s1213_s3 + $0x8] sm:$0xff] (!%p783_p12) }
  0xc1   : > { %324 = vst.msk [vmem:[#allocation2 + $0x18] sm:$0xff] %vm320_vm1, %v319_v23  ;;  %322 = vst.msk [vmem:[#allocation2 + $0x8] sm:$0xff] %vm320_vm1, %v317_v24  ;;  %v622_v23 = vld [vmem:[%s1213_s3 + $0x10] sm:$0xff] (!%p783_p12)  ;;  %v623_v24 = vld [vmem:[%s1213_s3 + $0x18] sm:$0xff] (!%p783_p12) }
  0xc2   : > { %v336_v27 = vpop.xlane.xlu1 %335  ;;  %v334_v28 = vpop.xlane.xlu0 %333 }
  0xc3   : > { %v342_v29 = vadd.f32 %v336_v27, %v326_v25  ;;  %v341_v30 = vadd.f32 %v334_v28, %v325_v26  ;;  %352 = sbr.rel (%p783_p12) target bundleno = 1150 (0x47e), region = 86 }
  0xc4   : > { %v353_v45 = vld [vmem:[#allocation2] sm:$0xff] (!%p783_p12)  ;;  %v355_v52 = vld [vmem:[#allocation2 + $0x10] sm:$0xff] (!%p783_p12) }
  0xc5   : > { %346 = vst.msk [vmem:[#allocation3 + $0x8] sm:$0xff] %vm320_vm1, %v342_v29  ;;  %345 = vst.msk [vmem:[#allocation3] sm:$0xff] %vm320_vm1, %v341_v30 }
  0xc6   : > { %v340_v33 = vpop.xlane.xlu1 %339  ;;  %v338_v34 = vpop.xlane.xlu0 %337 }
  0xc7   : > { %v344_v35 = vadd.f32 %v340_v33, %v328_v31  ;;  %v343_v36 = vadd.f32 %v338_v34, %v327_v32 }
  0xc8   : > { %v354_v46 = vld [vmem:[#allocation2 + $0x8] sm:$0xff] (!%p783_p12)  ;;  %v356_v53 = vld [vmem:[#allocation2 + $0x18] sm:$0xff] (!%p783_p12) }
  0xc9   : > { %348 = vst.msk [vmem:[#allocation3 + $0x18] sm:$0xff] %vm320_vm1, %v344_v35  ;;  %347 = vst.msk [vmem:[#allocation3 + $0x10] sm:$0xff] %vm320_vm1, %v343_v36 }
  0xcc   : > { %v357_v37 = vld [vmem:[#allocation3] sm:$0xff]  ;;  %v358_v38 = vld [vmem:[#allocation3 + $0x8] sm:$0xff] }
  0xcd   : > { %v914_v40 = vpack.i.bf16 %v358_v38, %v357_v37 }
  0xcf   : > { %915 = vrot.lane.b32.xlu0 %v914_v40, %s989_s8 }
  0xd0   : > { %v359_v39 = vld [vmem:[#allocation3 + $0x10] sm:$0xff]  ;;  %v360_v41 = vld [vmem:[#allocation3 + $0x18] sm:$0xff] }
  0xd1   : > { %v919_v43 = vpack.i.bf16 %v360_v41, %v359_v39 }
  0xd3   : > { %920 = vrot.lane.b32.xlu0 %v919_v43, %s989_s8 }
 0x141   : > { %v916_v44 = vpop.permute.xlu0 %915 }
 0x142   : > { %v918_v47 = vunpack.i.h.bf16 %v916_v44  ;;  %v917_v48 = vunpack.i.l.bf16 %v916_v44 }
 0x144   : > { %v377_v49 = vsel %vm320_vm1, %v353_v45, %v917_v48  ;;  %v378_v50 = vsel %vm320_vm1, %v354_v46, %v918_v47 }
 0x145   : > { %v921_v51 = vpop.permute.xlu0 %920  ;;  %v839_v54 = vpack.c.bf16 %v378_v50, %v377_v49  ;;  %v645_v49 = vld [vmem:[%s1214_s4 + $0x8] sm:$0xff] }
 0x146   : > { %v923_v55 = vunpack.i.h.bf16 %v921_v51  ;;  %v922_v56 = vunpack.i.l.bf16 %v921_v51 }
 0x147   : > { %840 = vmatprep.subr.bf16.mxu0 %v839_v54 }
 0x148   : > { %v379_v57 = vsel %vm320_vm1, %v355_v52, %v922_v56  ;;  %v380_v58 = vsel %vm320_vm1, %v356_v53, %v923_v55  ;;  %842 = vmatpush3.bf16.msra.mxu0 %v839_v54  ;;  %v644_v53 = vld [vmem:[%s1214_s4] sm:$0xff] }
 0x149   : > { %v843_v59 = vpack.c.bf16 %v380_v58, %v379_v57  ;;  %v647_v57 = vld [vmem:[%s1214_s4 + $0x18] sm:$0xff] }
 0x14b   : > { %844 = vmatprep.subr.bf16.mxu0 %v843_v59 }
 0x14c   : > { %846 = vmatpush3.bf16.msra.mxu0 %v843_v59  ;;  %v646_v59 = vld [vmem:[%s1214_s4 + $0x10] sm:$0xff] }
 0x14f   : > { %820 = vmatmul.mubr.msk.f32.vlgmr.msra.gmra.mrb[0].mxu0 %vm385_vm2, %v382_v60 }
 0x150   : > { %822 = vmatprep.mubr.msk.f32.mxu0 %vm385_vm2, %v383_v61 }
 0x153   : > { %823 = vmatmul.mubr.msk.f32.gmra.mrb[2].mxu0 %vm385_vm2, %v384_v62 }
 0x222   : > { %v821_v0 = vpop.f32.mrb[0].mxu0 }
 0x223   : > { %v464_v1 = vpop.f32.mrb[1].mxu0 }
 0x224   : > { %v847_v2 = vpack.c.bf16 %v821_v0, %v464_v1 }
 0x226   : > { %v824_v3 = vpop.f32.mrb[2].mxu0  ;;  %848 = vmatprep.subr.bf16.mxu1 %v847_v2 }
 0x227   : > { %v474_v4 = vpop.f32.mrb[3].mxu0  ;;  %850 = vmatpush3.bf16.msra.mxu1 %v847_v2 }
 0x228   : > { %v851_v5 = vpack.c.bf16 %v824_v3, %v474_v4 }
 0x22a   : > { %852 = vmatprep.subr.bf16.mxu1 %v851_v5 }
 0x22b   : > { %854 = vmatpush3.bf16.msra.mxu1 %v851_v5 }
 0x22e   : > { %834 = vmatmul.mubr.msk.f32.vlgmr.msra.gmra.mrb[0].mxu1 %vm385_vm2, %v484_v6 }
 0x22f   : > { %836 = vmatprep.mubr.msk.f32.mxu1 %vm385_vm2, %v485_v7 }
 0x232   : > { %837 = vmatmul.mubr.msk.f32.gmra.mrb[2].mxu1 %vm385_vm2, %v486_v8 }
 0x301   : > { %v835_v9 = vpop.f32.mrb[0].mxu1 }
 0x302   : > { %v585_v10 = vmul.f32 0.00390625, %v835_v9  ;;  %v565_v11 = vpop.f32.mrb[1].mxu1 }
 0x303   : > { %v584_v12 = vmul.f32 0.00390625, %v565_v11 }
 0x304   : > { %v589_v13 = vmul.f32 %v585_v10, %v585_v10 }
 0x305   : > { %v838_v14 = vpop.f32.mrb[2].mxu1  ;;  %v588_v18 = vmul.f32 %v584_v12, %v584_v12 }
 0x306   : > { %v1139_v15 = vmul.f32 0.00390625, %v838_v14  ;;  %598 = vrot.lane.b32.xlu1 %v589_v13, %s989_s8  ;;  %v575_v16 = vpop.f32.mrb[3].mxu1 }
 0x307   : > { %v586_v17 = vmul.f32 0.00390625, %v575_v16 }
 0x308   : > { %v591_v20 = vmul.f32 %v1139_v15, %v1139_v15 }
 0x309   : > { %v590_v19 = vmul.f32 %v586_v17, %v586_v17 }
 0x30a   : > { %596 = vrot.lane.b32.xlu1 %v588_v18, %s989_s8 }
 0x30b   : > { %600 = vrot.lane.b32.xlu0 %v590_v19, %s989_s8 }
 0x30e   : > { %602 = vrot.lane.b32.xlu1 %v591_v20, %s989_s8 }
 0x30f   : > { %628 = vrot.lane.b32.xlu0 %v620_v21, %s989_s8 }
 0x312   : > { %630 = vrot.lane.b32.xlu1 %v621_v22, %s989_s8 }
 0x313   : > { %632 = vrot.lane.b32.xlu0 %v622_v23, %s989_s8 }
 0x316   : > { %634 = vrot.lane.b32.xlu1 %v623_v24, %s989_s8 }
 0x378   : > { %v599_v25 = vpop.permute.xlu1 %598 }
 0x379   : > { %v609_v26 = vsub.f32 %v585_v10, %v599_v25 }
 0x37b   : > { %v613_v27 = vadd.f32 1e-06, %v609_v26 }
 0x37c   : > { %v597_v28 = vpop.permute.xlu1 %596 }
 0x37d   : > { %924 = vrsqrt.f32 %v613_v27  ;;  %v608_v29 = vsub.f32 %v584_v12, %v597_v28  ;;  %v601_v30 = vpop.permute.xlu0 %600 }
 0x37e   : > { %v610_v31 = vsub.f32 %v586_v17, %v601_v30 }
 0x37f   : > { %v612_v32 = vadd.f32 1e-06, %v608_v29 }
 0x380   : > { %v614_v33 = vadd.f32 1e-06, %v610_v31  ;;  %v603_v34 = vpop.permute.xlu1 %602 }
 0x381   : > { %926 = vrsqrt.f32 %v612_v32  ;;  %v611_v35 = vsub.f32 %v1139_v15, %v603_v34  ;;  %v629_v39 = vpop.permute.xlu0 %628 }
 0x382   : > { %928 = vrsqrt.f32 %v614_v33 }
 0x383   : > { %v615_v36 = vadd.f32 1e-06, %v611_v35 }
 0x384   : > { %v631_v37 = vpop.permute.xlu1 %630 }
 0x385   : > { %930 = vrsqrt.f32 %v615_v36  ;;  %v633_v44 = vpop.permute.xlu0 %632 }
 0x387   : > { %v925_v38 = vpop.eup %924 }
 0x388   : > { %v641_v40 = vmul.f32 %v925_v38, %v631_v37  ;;  %v635_v45 = vpop.permute.xlu1 %634 }
 0x38a   : > { %654 = vrot.lane.b32.xlu1 %v641_v40, %s990_s14 }
 0x38b   : > { %v927_v41 = vpop.eup %926 }
 0x38c   : > { %v640_v42 = vmul.f32 %v927_v41, %v629_v39  ;;  %v929_v43 = vpop.eup %928 }
 0x38d   : > { %v642_v47 = vmul.f32 %v929_v43, %v633_v44 }
 0x38e   : > { %652 = vrot.lane.b32.xlu0 %v640_v42, %s990_s14 }
 0x38f   : > { %v931_v46 = vpop.eup %930 }
 0x390   : > { %v643_v48 = vmul.f32 %v931_v46, %v635_v45 }
 0x392   : > { %658 = vrot.lane.b32.xlu1 %v643_v48, %s990_s14  ;;  %656 = vrot.lane.b32.xlu0 %v642_v47, %s990_s14 }
 0x3fc   : > { %v655_v50 = vpop.permute.xlu1 %654 }
 0x3fd   : > { %v665_v51 = vmul.f32 %v655_v50, %v585_v10 }
 0x3ff   : > { %v669_v52 = vsub.f32 %v645_v49, %v665_v51 }
 0x400   : > { %v653_v54 = vpop.permute.xlu0 %652 }
 0x401   : > { %v664_v55 = vmul.f32 %v653_v54, %v584_v12  ;;  %678 = vrot.lane.b32.xlu1 %v669_v52, %s989_s8 }
 0x403   : > { %v668_v56 = vsub.f32 %v644_v53, %v664_v55 }
 0x404   : > { %v659_v58 = vpop.permute.xlu1 %658  ;;  %v657_v60 = vpop.permute.xlu0 %656 }
 0x405   : > { %v667_v61 = vmul.f32 %v659_v58, %v1139_v15  ;;  %v666_v62 = vmul.f32 %v657_v60, %v586_v17  ;;  %676 = vrot.lane.b32.xlu0 %v668_v56, %s989_s8 }
 0x407   : > { %v671_v63 = vsub.f32 %v647_v57, %v667_v61  ;;  %v670_v0 = vsub.f32 %v646_v59, %v666_v62 }
 0x409   : > { %682 = vrot.lane.b32.xlu1 %v671_v63, %s989_s8  ;;  %680 = vrot.lane.b32.xlu0 %v670_v0, %s989_s8 }
 0x473   : > { %v679_v1 = vpop.permute.xlu1 %678 }
 0x474   : > { %v689_v2 = vsel %vm320_vm1, %v655_v50, %v679_v1 }
 0x475   : > { %694 = vst.msk [vmem:[%s1089_s30 + $0x8] sm:$0xff] %vm692_vm3, %v689_v2 }
 0x477   : > { %v677_v3 = vpop.permute.xlu0 %676 }
 0x478   : > { %v688_v4 = vsel %vm320_vm1, %v653_v54, %v677_v3 }
 0x479   : > { %693 = vst.msk [vmem:[%s1089_s30] sm:$0xff] %vm692_vm3, %v688_v4 }
 0x47b   : > { %v683_v5 = vpop.permute.xlu1 %682  ;;  %v681_v6 = vpop.permute.xlu0 %680 }
 0x47c   : > { %v691_v7 = vsel %vm320_vm1, %v659_v58, %v683_v5  ;;  %v690_v8 = vsel %vm320_vm1, %v657_v60, %v681_v6 }
 0x47d   : > { %696 = vst.msk [vmem:[%s1089_s30 + $0x18] sm:$0xff] %vm692_vm3, %v691_v7  ;;  %695 = vst.msk [vmem:[%s1089_s30 + $0x10] sm:$0xff] %vm692_vm3, %v690_v8 }
 0x47e PF: > { %s15_s24 = sadd.s32 1, %s986_s24   ;;  %s1216_s18 = smov %s966_s19 }
 0x47f   : > { %p12_p13 = scmp.ge.s32.totalorder %s15_s24, 6   ;;  %s1217_s19 = smov %s1072_s6 }
 0x480   : > { %s1218_s20 = smov %s978_s22  ;;  %s1219_s21 = smov %s982_s23 }
 0x481   : > { %s1220_s22 = smov %s1223_s25  ;;  %s1221_s23 = smov %s1227_s26 }
 0x482   :  { %14 = sbr.rel (!%p12_p13) target bundleno = 4 (0x4), region = 121 }

// kernel: nonlocal_block.4
= control target key start
LH: loop header
LB: loop body
LE: loop exit
PB: predicated region body
PF: predicated region fallthrough
CT: control target
= control target key end

     0   :  { %s1430_s21 = smov 0   ;;  %s1432_s22 = smov 0   ;;  %s1669_s0 = inlined_call_operand.vmem [shape: f32[2,32,256], index: 0, kind: input, shape index: {}]   ;;  %s1670_s1 = inlined_call_operand.vmem [shape: f32[2,32,2], index: 1, kind: input, shape index: {}]   ;;  %s1671_s2 = inlined_call_operand.vmem [shape: bf16[96,32], index: 2, kind: input, shape index: {}]   ;;  %s1672_s3 = inlined_call_operand.vmem [shape: f32[96,1], index: 3, kind: input, shape index: {}]   ;;  %s1673_s4 = inlined_call_operand.vmem [shape: bf16[2,64,256], index: 4, kind: output, shape index: {0}]   ;;  %s1674_s5 = inlined_call_operand.vmem [shape: bf16[2,256,32], index: 5, kind: output, shape index: {1}]   ;;  %s1675_s6 = inlined_call_operand.vmem [shape: bf16[2,32,256], index: 6, kind: output, shape index: {2}]  }
   0x1   :  { %s1434_s23 = smov 0   ;;  %s1436_s24 = smov 0  }
   0x2   :  { %s1438_s25 = smov 0   ;;  %s1440_s26 = smov 0  }
   0x3   :  { %s1442_s27 = smov 0  }
   0x4 LB: > { %s26_s28 = sadd.s32 1, %s1383_s25  ;;  %s29_s29 = sadd.s32 1, %s1387_s26  ;;  %s1391_s27 = sphi %s1442_s27, %s17_s27   ;;  %s1387_s26 = sphi %s1440_s26, %s1682_s26   ;;  %s1383_s25 = sphi %s1438_s25, %s1681_s25   ;;  %s1379_s24 = sphi %s1436_s24, %s1680_s24   ;;  %s1375_s23 = sphi %s1434_s23, %s1679_s23   ;;  %s1371_s22 = sphi %s1432_s22, %s1678_s22   ;;  %s1367_s21 = sphi %s1430_s21, %s1677_s21  }
   0x5   : > { %p27_p0 = scmp.ge.s32.totalorder %s26_s28, 2  ;;  %s1110_s30 = sadd.s32 4294967295, %s1391_s27  }
   0x6   : > { %p45_p1 = scmp.ne.s32.totalorder %s1371_s22, %s1367_s21  ;;  %p46_p2 = scmp.eq.s32.totalorder %s1391_s27, 0 }
   0x7   : > { %s1684_s28 = smov (%p27_p0, %s26_s28), 0  ;;  %s1686_s29 = smov (!%p27_p0, %s29_s29), %s1387_s26 }
   0x8   : > { %p31_p3 = scmp.ge.s32.totalorder %s1686_s29, 2  ;;  %p145_p4 = scmp.eq.s32.totalorder %s1110_s30, 3 }
   0x9   : > { %s34_s7 = ssub.s32 %s1383_s25, %s1684_s28  ;;  %p47_p5 = por %p46_p2, %p45_p1 }
   0xa   : > { %s1688_s29 = smov (%p31_p3, %s1686_s29), 0  ;;  %p1478_p6 = por %p145_p4, %p45_p1 }
   0xb   : > { %s33_s9 = ssub.s32 %s1387_s26, %s1688_s29  ;;  %s38_s11 = sadd.s32 1, %s1371_s22 }
   0xc   : > { %s35_s10 = sor.u32 %s34_s7, %s33_s9  ;;  %p1113_p8 = scmp.ge.s32.totalorder %s1391_s27, 4 }
   0xd   : > { %p36_p7 = scmp.eq.s32.totalorder %s35_s10, 0 }
   0xe   : > { %229 = sbr.rel (%p1113_p8) target bundleno = 29 (0x1d), region = 24 }
   0xf   : > { %s1486_s12 = scalar_select %p36_p7, %s1371_s22, %s38_s11  }
  0x15   : > { %232 = sbr.rel (!%p47_p5) target bundleno = 29 (0x1d), region = 28  ;;  %s234_s13 = sand.u32 (%p47_p5), 1, %s1371_s22  }
  0x16   : > { %s1115_s14 = sshll.u32 (%p47_p5), %s1387_s26, 3  ;;  %s1114_s15 = sshll.u32 (%p47_p5), %s234_s13, 5 }
  0x17   : > { %s238_s16 = sadd.s32 (%p47_p5), %s1383_s25, %s1115_s14  ;;  %s236_s30 = scalar_lea.vmem (%p47_p5), [#allocation2], %s1114_s15 }
  0x18   : > { %s1116_s17 = sshll.u32 (%p47_p5), %s238_s16, 3 }
  0x19   : > { %s240_s20 = scalar_lea.vmem (%p47_p5), %s1669_s0, %s1116_s17 }
  0x1a   : > { %v274_v0 = vld [vmem:[%s240_s20] sm:$0xff] (%p47_p5)  ;;  %v276_v1 = vld [vmem:[%s240_s20 + $0x10] sm:$0xff] (%p47_p5) }
  0x1b   : > { %v278_v2 = vld [vmem:[%s240_s20 + $0x20] sm:$0xff] (%p47_p5)  ;;  %275 = vst [vmem:[%s236_s30] sm:$0xff] (%p47_p5), %v274_v0  ;;  %277 = vst [vmem:[%s236_s30 + $0x8] sm:$0xff] (%p47_p5), %v276_v1  ;;  %v280_v3 = vld [vmem:[%s240_s20 + $0x30] sm:$0xff] (%p47_p5) }
  0x1c   : > { %279 = vst [vmem:[%s236_s30 + $0x10] sm:$0xff] %v278_v2  ;;  %281 = vst [vmem:[%s236_s30 + $0x18] sm:$0xff] %v280_v3 }
  0x1d PF: > { %p1117_p9 = scmp.ge.s32.totalorder %s1391_s27, 1  ;;  %p294_p10 = scmp.lt.s32.totalorder %s1391_s27, 5 }
  0x1f   : > { %p295_p11 = pnand %p1117_p9, %p294_p10 }
  0x20   : > { %p347_p12 = scmp.lt.s32.totalorder (!%p295_p11), %s1379_s24, 1  ;;  %v1393_v4 = vmov (!%p295_p11), 1   ;;  %v1394_v5 = vmov (!%p295_p11), 0   ;;  %v1331_v10 = vld [vmem:[%s1671_s2] sm:$0xff] (!%p295_p11)   ;;  %vm531_vm0 = vcmask (!%p295_p11), 261120   ;;  %v1332_v11 = vld [vmem:[%s1671_s2 + $0x10] sm:$0xff] (!%p295_p11)  }
  0x21   : > { %298 = sbr.rel (%p295_p11) target bundleno = 609 (0x261), region = 70  ;;  %1325 = vset.pattern.permute.xlu1 (!%p295_p11), %v1393_v4  ;;  %1324 = vset.pattern.permute.xlu0 (!%p295_p11), %v1394_v5  ;;  %v433_v12 = vld [vmem:[%s1672_s3 + $0x20] sm:$0xff] (!%p295_p11)  ;;  %v434_v13 = vld [vmem:[%s1672_s3 + $0x28] sm:$0xff] (!%p295_p11)  ;;  %v435_v14 = vld [vmem:[%s1672_s3 + $0x30] sm:$0xff] (!%p295_p11)  ;;  %s301_s20 = sand.u32 (!%p295_p11), 1, %s1367_s21   ;;  %vm771_vm1 = vcmask (!%p295_p11), 257024  }
  0x22   : > { %1249 = vmatprep.mubr.msk.bf16.mxu0 (!%p295_p11), %vm531_vm0, %v1331_v10  ;;  %1253 = vmatprep.mubr.msk.bf16.mxu1 (!%p295_p11), %vm531_vm0, %v1332_v11  ;;  %v429_v15 = vld [vmem:[%s1672_s3] sm:$0xff] (!%p295_p11)  ;;  %v436_v16 = vld [vmem:[%s1672_s3 + $0x38] sm:$0xff] (!%p295_p11)  ;;  %v431_v17 = vld [vmem:[%s1672_s3 + $0x10] sm:$0xff] (!%p295_p11)  ;;  %s1552_s30 = sshll.u32 (!%p295_p11), %s301_s20, 5  ;;  %s1120_s11 = sshll.u32 (!%p295_p11), %s301_s20, 4 }
  0x23   : > { %v430_v18 = vld [vmem:[%s1672_s3 + $0x8] sm:$0xff] (!%p295_p11)  ;;  %v437_v19 = vld [vmem:[%s1672_s3 + $0x40] sm:$0xff] (!%p295_p11)  ;;  %v432_v20 = vld [vmem:[%s1672_s3 + $0x18] sm:$0xff] (!%p295_p11)  ;;  %s303_s10 = scalar_lea.vmem (!%p295_p11), [#allocation2], %s1552_s30  ;;  %s1555_s21 = scalar_lea.vmem (!%p295_p11), [#allocation4], %s1120_s11 }
  0x24   : > { %v439_v21 = vld [vmem:[%s1672_s3 + $0x50] sm:$0xff] (!%p295_p11)  ;;  %v438_v22 = vld [vmem:[%s1672_s3 + $0x48] sm:$0xff] (!%p295_p11)  ;;  %v440_v23 = vld [vmem:[%s1672_s3 + $0x58] sm:$0xff] (!%p295_p11) }
  0x25   : > { %v363_v26 = vld [vmem:[%s303_s10] sm:$0xff] (!%p295_p11)  ;;  %v364_v27 = vld [vmem:[%s303_s10 + $0x8] sm:$0xff] (!%p295_p11)  ;;  %v365_v36 = vld [vmem:[%s303_s10 + $0x10] sm:$0xff] (!%p295_p11) }
  0x26   : > { %v366_v38 = vld [vmem:[%s303_s10 + $0x18] sm:$0xff] (!%p295_p11)  ;;  %v1333_v46 = vld [vmem:[%s1671_s2 + $0x8] sm:$0xff] (!%p295_p11)   ;;  %v1335_v48 = vld [vmem:[%s1671_s2 + $0x20] sm:$0xff] (!%p295_p11)   ;;  %s1576_s10 = scalar_lea.vmem (!%p295_p11), [#allocation3], %s1552_s30  ;;  %s1123_s30 = sshll.u32 (!%p295_p11), %s1375_s23, 4 }
  0x27   : > { %v1334_v47 = vld [vmem:[%s1671_s2 + $0x18] sm:$0xff] (!%p295_p11)   ;;  %v1336_v49 = vld [vmem:[%s1671_s2 + $0x28] sm:$0xff] (!%p295_p11)   ;;  %p355_p13 = scmp.lt.s32.totalorder (!%p295_p11), %s1123_s30, 31 }
  0x28   : > { %s1499_s7 = scalar_select %p347_p12, %s1379_s24, 1 }
  0x29   : > { %s1690_s30 = smov (!%p355_p13, %s1123_s30), 31 }
  0x2a   : > { %s1174_s9 = sshll.u32 %s1499_s7, 5  ;;  %s1168_s7 = sshll.u32 (%p1478_p6), %s1379_s24, 4 }
  0x2b   : > { %s351_s13 = scalar_lea.vmem %s1670_s1, %s1174_s9  ;;  %s358_s11 = sadd.s32 %s1174_s9, %s1690_s30 }
  0x2c   : > { %v367_v6 = vld [vmem:[%s351_s13] sm:$0xff]  ;;  %v368_v7 = vld [vmem:[%s351_s13 + $0x8] sm:$0xff]  ;;  %v369_v8 = vld [vmem:[%s351_s13 + $0x10] sm:$0xff]  ;;  %s827_s9 = sadd.s32 (%p1478_p6), %s1375_s23, %s1168_s7 }
  0x2d   : > { %396 = vperm.xlu1 %1325, %v367_v6   ;;  %373 = vperm.xlu0 %1324, %v367_v6   ;;  %v370_v9 = vld [vmem:[%s351_s13 + $0x18] sm:$0xff]  ;;  %s1125_s13 = sshll.u32 %s358_s11, 2  ;;  %s1169_s17 = sshll.u32 (%p1478_p6), %s827_s9, 2 }
  0x2e   : > { %s1588_s16 = scalar_lea.vmem %s1674_s5, %s1125_s13  ;;  %s829_s20 = scalar_lea.vmem (%p1478_p6), %s1673_s4, %s1169_s17 }
  0x31   : > { %400 = vperm.xlu1 %1325, %v368_v7   ;;  %378 = vperm.xlu0 %1324, %v368_v7  }
  0x35   : > { %1326 = vset.pattern.permute.xlu1 %v1394_v5  ;;  %383 = vperm.xlu0 %1324, %v369_v8  }
  0x36   : > { %388 = vperm.xlu1 %1326, %v370_v9  }
  0x39   : > { %1327 = vset.pattern.permute.xlu0 %v1393_v4 }
  0x3a   : > { %1328 = vset.pattern.permute.xlu1 %v1393_v4  ;;  %404 = vperm.xlu0 %1327, %v369_v8  }
  0x3b   : > { %408 = vperm.xlu1 %1328, %v370_v9  }
  0x3e   : > { %1330 = vset.pattern.permute.xlu0 %v1394_v5 }
  0x3f   : > { %1329 = vset.pattern.permute.xlu1 %v1394_v5  ;;  %468 = vperm.xlu0 %1330, %v434_v13  }
  0x40   : > { %463 = vperm.xlu1 %1329, %v433_v12  }
  0x43   : > { %443 = vperm.xlu0 %1330, %v429_v15  }
  0x44   : > { %473 = vperm.xlu1 %1329, %v435_v14  }
  0x47   : > { %453 = vperm.xlu0 %1330, %v431_v17  }
  0x48   : > { %478 = vperm.xlu1 %1329, %v436_v16  }
  0x4b   : > { %483 = vperm.xlu0 %1330, %v437_v19  }
  0x4c   : > { %448 = vperm.xlu1 %1329, %v430_v18  }
  0x4f   : > { %493 = vperm.xlu0 %1330, %v439_v21  }
  0x50   : > { %458 = vperm.xlu1 %1329, %v432_v20  }
  0x54   : > { %488 = vperm.xlu1 %1329, %v438_v22  }
  0x58   : > { %498 = vperm.xlu1 %1329, %v440_v23  }
  0xac   : > { %v397_v24 = vpop.permute.xlu1 %396  ;;  %v374_v25 = vpop.permute.xlu0 %373 }
  0xad   : > { %v391_v28 = vmul.f32 %v374_v25, %v363_v26 }
  0xaf   : > { %v411_v32 = vadd.f32 %v397_v24, %v391_v28 }
  0xb0   : > { %v401_v29 = vpop.permute.xlu1 %400  ;;  %v379_v30 = vpop.permute.xlu0 %378 }
  0xb1   : > { %v392_v31 = vmul.f32 %v379_v30, %v364_v27 }
  0xb3   : > { %v412_v33 = vadd.f32 %v401_v29, %v392_v31 }
  0xb4   : > { %v384_v34 = vpop.permute.xlu0 %383 }
  0xb5   : > { %v415_v35 = vpack.c.bf16 %v412_v33, %v411_v32  ;;  %v389_v37 = vpop.permute.xlu1 %388  ;;  %v393_v39 = vmul.f32 %v384_v34, %v365_v36 }
  0xb6   : > { %v394_v40 = vmul.f32 %v389_v37, %v366_v38 }
  0xb7   : > { %1227 = vst [vmem:[%s1555_s21] sm:$0xff] %v415_v35   ;;  %1245 = vmatprep.subr.bf16.mxu0 %v415_v35  ;;  %1261 = vmatprep.subr.bf16.mxu1 %v415_v35 }
  0xb8   : > { %1246 = vmatpush3.bf16.msra.mxu0 %v415_v35  ;;  %1263 = vmatpush3.bf16.msra.mxu1 %v415_v35 }
  0xb9   : > { %v405_v41 = vpop.permute.xlu0 %404 }
  0xba   : > { %v413_v42 = vadd.f32 %v405_v41, %v393_v39  ;;  %v409_v43 = vpop.permute.xlu1 %408 }
  0xbb   : > { %v414_v44 = vadd.f32 %v409_v43, %v394_v40 }
  0xbd   : > { %v416_v45 = vpack.c.bf16 %v414_v44, %v413_v42 }
  0xbe   : > { %v469_v53 = vpop.permute.xlu0 %468 }
  0xbf   : > { %1236 = vst [vmem:[%s1555_s21 + $0x8] sm:$0xff] %v416_v45   ;;  %1247 = vmatprep.subr.bf16.mxu0 %v416_v45  ;;  %1262 = vmatprep.subr.bf16.mxu1 %v416_v45  ;;  %v464_v50 = vpop.permute.xlu1 %463 }
  0xc0   : > { %1248 = vmatpush3.bf16.msra.mxu0 %v416_v45  ;;  %1264 = vmatpush3.bf16.msra.mxu1 %v416_v45 }
  0xc2   : > { %v444_v55 = vpop.permute.xlu0 %443 }
  0xc3   : > { %1250 = vmatmul.mubr.msk.bf16.vlgmr.msra.gmra.mrb[0].mxu0 %vm531_vm0, %v1333_v46  ;;  %1254 = vmatmul.mubr.msk.bf16.vlgmr.msra.gmra.mrb[0].mxu1 %vm531_vm0, %v1334_v47  ;;  %v474_v51 = vpop.permute.xlu1 %473 }
  0xc4   : > { %1257 = vmatprep.mubr.msk.bf16.mxu1 %vm531_vm0, %v1335_v48 }
  0xc6   : > { %v454_v57 = vpop.permute.xlu0 %453 }
  0xc7   : > { %v479_v52 = vpop.permute.xlu1 %478 }
  0xca   : > { %v484_v8 = vpop.permute.xlu0 %483 }
  0xcb   : > { %1258 = vmatmul.mubr.msk.bf16.gmra.mrb[4].mxu1 %vm531_vm0, %v1336_v49  ;;  %v449_v54 = vpop.permute.xlu1 %448 }
  0xce   : > { %v494_v20 = vpop.permute.xlu0 %493 }
  0xcf   : > { %v459_v56 = vpop.permute.xlu1 %458 }
  0xd3   : > { %v489_v58 = vpop.permute.xlu1 %488 }
  0xd7   : > { %v499_v17 = vpop.permute.xlu1 %498 }
 0x196   : > { %v1251_v59 = vpop.f32.mrb[0].mxu0  ;;  %v1255_v60 = vpop.f32.mrb[0].mxu1 }
 0x197   : > { %v593_v61 = vadd.f32 %v1251_v59, %v454_v57  ;;  %v584_v62 = vpop.f32.mrb[1].mxu0  ;;  %v600_v63 = vpop.f32.mrb[1].mxu1  ;;  %v609_v19 = vadd.f32 %v1255_v60, %v474_v51 }
 0x198   : > { %v585_v0 = vadd.f32 %v584_v62, %v444_v55  ;;  %v601_v1 = vadd.f32 %v600_v63, %v464_v50  ;;  %v1252_v2 = vpop.f32.mrb[2].mxu0  ;;  %v1256_v3 = vpop.f32.mrb[2].mxu1 }
 0x199   : > { %v633_v4 = vmul.f32 0.25503486, %v593_v61  ;;  %v596_v5 = vadd.f32 %v1252_v2, %v459_v56  ;;  %v587_v6 = vpop.f32.mrb[3].mxu0  ;;  %v603_v7 = vpop.f32.mrb[3].mxu1  ;;  %v612_v28 = vadd.f32 %v1256_v3, %v479_v52 }
 0x19a   : > { %v631_v9 = vmul.f32 0.25503486, %v585_v0  ;;  %v588_v10 = vadd.f32 %v587_v6, %v449_v54  ;;  %675 = vxpose.xlu0.b32.start [1/4] (short) %v601_v1, 128  ;;  %v604_v13 = vadd.f32 %v603_v7, %v469_v53 }
 0x19b   : > { %v634_v11 = vmul.f32 0.25503486, %v596_v5 }
 0x19c   : > { %v632_v12 = vmul.f32 0.25503486, %v588_v10 }
 0x19d   : > { %v1211_v14 = vpack.c.bf16 %v634_v11, %v633_v4 }
 0x19e   : > { %v1206_v15 = vpack.c.bf16 %v632_v12, %v631_v9  ;;  %v1259_v16 = vpop.f32.mrb[4].mxu1  ;;  %676 = vxpose.xlu0.b32.cont [2/4] (short) %v604_v13, 128 }
 0x19f   : > { %1233 = vst [vmem:[%s1576_s10 + $0x8] sm:$0xff] %v1211_v14   ;;  %v616_v18 = vpop.f32.mrb[5].mxu1  ;;  %v625_v22 = vadd.f32 %v1259_v16, %v494_v20 }
 0x1a0   : > { %1207 = vst [vmem:[%s1576_s10] sm:$0xff] %v1206_v15   ;;  %v1260_v21 = vpop.f32.mrb[6].mxu1  ;;  %v617_v25 = vadd.f32 %v616_v18, %v484_v8 }
 0x1a1   : > { %v628_v23 = vadd.f32 %v1260_v21, %v499_v17  ;;  %v619_v24 = vpop.f32.mrb[7].mxu1 }
 0x1a2   : > { %v620_v26 = vadd.f32 %v619_v24, %v489_v58  ;;  %677 = vxpose.xlu0.b32.cont [3/4] (short) %v609_v19, 128 }
 0x1a3   : > { %v1221_v27 = vpack.c.bf16 %v628_v23, %v625_v22 }
 0x1a4   : > { %v1216_v29 = vpack.c.bf16 %v620_v26, %v617_v25 }
 0x1a5   : > { %1235 = vst [vmem:[%s1576_s10 + $0x18] sm:$0xff] %v1221_v27  }
 0x1a6   : > { %1234 = vst [vmem:[%s1576_s10 + $0x10] sm:$0xff] %v1216_v29   ;;  %678 = vxpose.xlu0.b32.end [4/4] (short) %v612_v28, 128  ;;  %v849_v0 = vld [vmem:[%s1576_s10 + $0x8] sm:$0xf] (%p1478_p6)  ;;  %v851_v1 = vld [vmem:[%s1576_s10 + $0xc] sm:$0xf] (%p1478_p6) }
 0x1a7   : > { %v845_v62 = vld [vmem:[%s1576_s10] sm:$0xf] (%p1478_p6)  ;;  %v847_v63 = vld [vmem:[%s1576_s10 + $0x4] sm:$0xf] (%p1478_p6)  ;;  %850 = vst [vmem:[%s829_s20 + $0x10] sm:$0xf] (%p1478_p6), %v849_v0 }
 0x1a8   : > { %846 = vst [vmem:[%s829_s20] sm:$0xf] (%p1478_p6), %v845_v62  ;;  %848 = vst [vmem:[%s829_s20 + $0x8] sm:$0xf] (%p1478_p6), %v847_v63 }
 0x1a9   : > { %852 = vst [vmem:[%s829_s20 + $0x18] sm:$0xf] (%p1478_p6), %v851_v1 }
 0x1ac   : > { %v857_v4 = vld [vmem:[%s1576_s10 + $0x18] sm:$0xf] (%p1478_p6)  ;;  %v859_v5 = vld [vmem:[%s1576_s10 + $0x1c] sm:$0xf] (%p1478_p6) }
 0x1ad   : > { %v853_v2 = vld [vmem:[%s1576_s10 + $0x10] sm:$0xf] (%p1478_p6)  ;;  %v855_v3 = vld [vmem:[%s1576_s10 + $0x14] sm:$0xf] (%p1478_p6)  ;;  %858 = vst [vmem:[%s829_s20 + $0x30] sm:$0xf] (%p1478_p6), %v857_v4 }
 0x1ae   : > { %854 = vst [vmem:[%s829_s20 + $0x20] sm:$0xf] (%p1478_p6), %v853_v2  ;;  %856 = vst [vmem:[%s829_s20 + $0x28] sm:$0xf] (%p1478_p6), %v855_v3 }
 0x1af   : > { %860 = vst [vmem:[%s829_s20 + $0x38] sm:$0xf] (%p1478_p6), %v859_v5 }
 0x21a   : > { %v691_v30 = vpop.trf.xlu0 }
 0x21b   : > { %v1183_v31 = vpack.c.bf16 %v691_v30, %v691_v30 }
 0x21d   : > { %772 = vst.msk [vmem:[%s1588_s16] sm:$0xf] %vm771_vm1, %v1183_v31 }
 0x21e   : > { %v692_v32 = vpop.trf.xlu0 }
 0x21f   : > { %v1184_v33 = vpack.c.bf16 %v692_v32, %v692_v32 }
 0x221   : > { %773 = vst.msk [vmem:[%s1588_s16 + $0x4] sm:$0xf] %vm771_vm1, %v1184_v33 }
 0x222   : > { %v693_v34 = vpop.trf.xlu0 }
 0x223   : > { %v1185_v35 = vpack.c.bf16 %v693_v34, %v693_v34 }
 0x225   : > { %774 = vst.msk [vmem:[%s1588_s16 + $0x8] sm:$0xf] %vm771_vm1, %v1185_v35 }
 0x226   : > { %v694_v36 = vpop.trf.xlu0 }
 0x227   : > { %v1186_v37 = vpack.c.bf16 %v694_v36, %v694_v36 }
 0x229   : > { %775 = vst.msk [vmem:[%s1588_s16 + $0xc] sm:$0xf] %vm771_vm1, %v1186_v37 }
 0x22a   : > { %v695_v38 = vpop.trf.xlu0 }
 0x22b   : > { %v1187_v39 = vpack.c.bf16 %v695_v38, %v695_v38 }
 0x22d   : > { %776 = vst.msk [vmem:[%s1588_s16 + $0x10] sm:$0xf] %vm771_vm1, %v1187_v39 }
 0x22e   : > { %v696_v40 = vpop.trf.xlu0 }
 0x22f   : > { %v1188_v41 = vpack.c.bf16 %v696_v40, %v696_v40 }
 0x231   : > { %777 = vst.msk [vmem:[%s1588_s16 + $0x14] sm:$0xf] %vm771_vm1, %v1188_v41 }
 0x232   : > { %v697_v42 = vpop.trf.xlu0 }
 0x233   : > { %v1189_v43 = vpack.c.bf16 %v697_v42, %v697_v42 }
 0x235   : > { %778 = vst.msk [vmem:[%s1588_s16 + $0x18] sm:$0xf] %vm771_vm1, %v1189_v43 }
 0x236   : > { %v698_v44 = vpop.trf.xlu0 }
 0x237   : > { %v1190_v45 = vpack.c.bf16 %v698_v44, %v698_v44 }
 0x239   : > { %779 = vst.msk [vmem:[%s1588_s16 + $0x1c] sm:$0xf] %vm771_vm1, %v1190_v45 }
 0x23a   : > { %v699_v46 = vpop.trf.xlu0 }
 0x23b   : > { %v1191_v47 = vpack.c.bf16 %v699_v46, %v699_v46 }
 0x23d   : > { %780 = vst.msk [vmem:[%s1588_s16 + $0x20] sm:$0xf] %vm771_vm1, %v1191_v47 }
 0x23e   : > { %v700_v48 = vpop.trf.xlu0 }
 0x23f   : > { %v1192_v49 = vpack.c.bf16 %v700_v48, %v700_v48 }
 0x241   : > { %781 = vst.msk [vmem:[%s1588_s16 + $0x24] sm:$0xf] %vm771_vm1, %v1192_v49 }
 0x242   : > { %v701_v50 = vpop.trf.xlu0 }
 0x243   : > { %v1193_v51 = vpack.c.bf16 %v701_v50, %v701_v50 }
 0x245   : > { %782 = vst.msk [vmem:[%s1588_s16 + $0x28] sm:$0xf] %vm771_vm1, %v1193_v51 }
 0x246   : > { %v702_v52 = vpop.trf.xlu0 }
 0x247   : > { %v1194_v53 = vpack.c.bf16 %v702_v52, %v702_v52 }
 0x249   : > { %783 = vst.msk [vmem:[%s1588_s16 + $0x2c] sm:$0xf] %vm771_vm1, %v1194_v53 }
 0x24a   : > { %v703_v54 = vpop.trf.xlu0 }
 0x24b   : > { %v1195_v55 = vpack.c.bf16 %v703_v54, %v703_v54 }
 0x24d   : > { %784 = vst.msk [vmem:[%s1588_s16 + $0x30] sm:$0xf] %vm771_vm1, %v1195_v55 }
 0x24e   : > { %v704_v56 = vpop.trf.xlu0 }
 0x24f   : > { %v1196_v57 = vpack.c.bf16 %v704_v56, %v704_v56 }
 0x251   : > { %785 = vst.msk [vmem:[%s1588_s16 + $0x34] sm:$0xf] %vm771_vm1, %v1196_v57 }
 0x252   : > { %v705_v58 = vpop.trf.xlu0 }
 0x253   : > { %v1197_v59 = vpack.c.bf16 %v705_v58, %v705_v58  ;;  %825 = sbr.rel (!%p1478_p6) target bundleno = 602 (0x25a), region = 78 }
 0x255   : > { %786 = vst.msk [vmem:[%s1588_s16 + $0x38] sm:$0xf] %vm771_vm1, %v1197_v59 }
 0x256   : > { %v706_v60 = vpop.trf.xlu0 }
 0x257   : > { %v1198_v61 = vpack.c.bf16 %v706_v60, %v706_v60 }
 0x259   : > { %787 = vst.msk [vmem:[%s1588_s16 + $0x3c] sm:$0xf] %vm771_vm1, %v1198_v61 }
 0x25a PF: > { %903 = sbr.rel (!%p1478_p6) target bundleno = 609 (0x261), region = 123  ;;  %s1170_s30 = sshll.u32 (%p1478_p6), %s1379_s24, 3  ;;  %v923_v6 = vld [vmem:[%s1555_s21] sm:$0xf] (%p1478_p6)  ;;  %v925_v7 = vld [vmem:[%s1555_s21 + $0x4] sm:$0xf] (%p1478_p6) }
 0x25b   : > { %s905_s10 = sadd.s32 (%p1478_p6), %s1375_s23, %s1170_s30  ;;  %v927_v8 = vld [vmem:[%s1555_s21 + $0x8] sm:$0xf] (%p1478_p6)  ;;  %v929_v9 = vld [vmem:[%s1555_s21 + $0xc] sm:$0xf] (%p1478_p6) }
 0x25c   : > { %s1171_s11 = sshll.u32 (%p1478_p6), %s905_s10, 2 }
 0x25d   : > { %s907_s15 = scalar_lea.vmem (%p1478_p6), %s1675_s6, %s1171_s11 }
 0x25e   : > { %924 = vst [vmem:[%s907_s15] sm:$0xf] (%p1478_p6), %v923_v6  ;;  %926 = vst [vmem:[%s907_s15 + $0x8] sm:$0xf] (%p1478_p6), %v925_v7 }
 0x25f   : > { %928 = vst [vmem:[%s907_s15 + $0x10] sm:$0xf] (%p1478_p6), %v927_v8  ;;  %930 = vst [vmem:[%s907_s15 + $0x18] sm:$0xf] (%p1478_p6), %v929_v9 }
 0x261 PF: > { %s17_s27 = sadd.s32 1, %s1391_s27   ;;  %s1677_s21 = smov %s1371_s22 }
 0x262   : > { %p14_p0 = scmp.ge.s32.totalorder %s17_s27, 6   ;;  %s1678_s22 = smov %s1486_s12 }
 0x263   : > { %s1679_s23 = smov %s1383_s25  ;;  %s1680_s24 = smov %s1387_s26 }
 0x264   : > { %s1681_s25 = smov %s1684_s28  ;;  %s1682_s26 = smov %s1688_s29 }
 0x265   :  { %16 = sbr.rel (!%p14_p0) target bundleno = 4 (0x4), region = 218 }

// kernel: nonlocal_block.5
= control target key start
LH: loop header
LB: loop body
LE: loop exit
PB: predicated region body
PF: predicated region fallthrough
CT: control target
= control target key end

     0   :  { %s1770_s0 = inlined_call_operand.vmem [shape: bf16[2,32,256], index: 0, kind: input, shape index: {}]   ;;  %s1771_s1 = inlined_call_operand.vmem [shape: bf16[2,64,256], index: 1, kind: input, shape index: {}, may-alias: {1,3}]   ;;  %s1772_s2 = inlined_call_operand.vmem [shape: bf16[2,256,32], index: 2, kind: input, shape index: {}]   ;;  %s1773_s3 = inlined_call_operand.vmem [shape: bf16[2,64,256], index: 3, kind: input, shape index: {}, may-alias: {1,3}]   ;;  %s1774_s4 = inlined_call_operand.vmem [shape: bf16[32,32], index: 4, kind: input, shape index: {}]   ;;  %s1775_s5 = inlined_call_operand.vmem [shape: f32[32,1], index: 5, kind: input, shape index: {}]   ;;  %s1776_s6 = inlined_call_operand.vmem [shape: f32[2,32,256], index: 6, kind: output, shape index: {}]  }
   0x1   :  { %1779 = sst [smem:[#allocation10_spill]] %s1770_s0 }
   0x2   :  { %1780 = sst [smem:[#allocation11_spill]] %s1771_s1 }
   0x3   :  { %s1537_s21 = smov 0   ;;  %s1539_s22 = smov 0  }
   0x4   :  { %s1541_s23 = smov 0   ;;  %s1543_s24 = smov 0  }
   0x5   :  { %s1545_s25 = smov 0   ;;  %s1547_s26 = smov 0  }
   0x6   :  { %s1549_s27 = smov 0   ;;  %s1551_s28 = smov 0  }
   0x7   :  { %s1553_s29 = smov 0  }
   0x8 LB: > { %s28_s30 = sadd.s32 1, %s1485_s26  ;;  %s31_s7 = sadd.s32 1, %s1489_s27  ;;  %s1497_s29 = sphi %s1553_s29, %s16_s29   ;;  %s1493_s28 = sphi %s1551_s28, %s1796_s28   ;;  %s1489_s27 = sphi %s1549_s27, %s1795_s27   ;;  %s1485_s26 = sphi %s1547_s26, %s1794_s26   ;;  %s1481_s25 = sphi %s1545_s25, %s1793_s25   ;;  %s1477_s24 = sphi %s1543_s24, %s1792_s24   ;;  %s1473_s23 = sphi %s1541_s23, %s1791_s23   ;;  %s1469_s22 = sphi %s1539_s22, %s1790_s22   ;;  %s1465_s21 = sphi %s1537_s21, %s1789_s21  }
   0x9   : > { %p29_p0 = scmp.ge.s32.totalorder %s28_s30, 2  ;;  %s1161_s8 = sadd.s32 4294967295, %s1497_s29  }
   0xa   : > { %s35_s9 = sadd.s32 1, %s1493_s28  ;;  %p51_p1 = scmp.ne.s32.totalorder %s1469_s22, %s1465_s21 }
   0xb   : > { %s1798_s30 = smov (%p29_p0, %s28_s30), 0  ;;  %s1800_s7 = smov (!%p29_p0, %s31_s7), %s1489_s27 }
   0xc   : > { %p52_p2 = scmp.eq.s32.totalorder %s1497_s29, 0  ;;  %p33_p3 = scmp.ge.s32.totalorder %s1800_s7, 2 }
   0xd   : > { %p205_p4 = scmp.eq.s32.totalorder %s1161_s8, 7  ;;  %s44_s15 = sadd.s32 1, %s1469_s22 }
   0xe   : > { %p1592_p5 = por %p52_p2, %p51_p1  ;;  %s1802_s7 = smov (%p33_p3, %s1800_s7), 0 }
   0xf   : > { %1782 = sst [smem:[#allocation8_spill]] %s1802_s7  ;;  %s1804_s9 = smov (!%p33_p3, %s35_s9), %s1493_s28 }
  0x10   : > { %p1599_p6 = por %p205_p4, %p51_p1  ;;  %p37_p7 = scmp.ge.s32.totalorder %s1804_s9, 2 }
  0x11   : > { %s40_s12 = ssub.s32 %s1489_s27, %s1802_s7  ;;  %p1164_p9 = scmp.ge.s32.totalorder %s1497_s29, 8 }
  0x12   : > { %s1806_s9 = smov (%p37_p7, %s1804_s9), 0 }
  0x13   : > { %1784 = sst [smem:[#allocation9_spill]] %s1806_s9  ;;  %s39_s13 = ssub.s32 %s1493_s28, %s1806_s9 }
  0x14   : > { %s41_s14 = sor.u32 %s40_s12, %s39_s13  ;;  %233 = sbr.rel (%p1164_p9) target bundleno = 51 (0x33), region = 24 }
  0x15   : > { %p42_p8 = scmp.eq.s32.totalorder %s41_s14, 0 }
  0x17   : > { %s1611_s16 = scalar_select %p42_p8, %s1469_s22, %s44_s15  }
  0x1b   : > { %236 = sbr.rel (!%p1592_p5) target bundleno = 39 (0x27), region = 28  ;;  %s238_s17 = sand.u32 (%p1592_p5), 1, %s1469_s22  }
  0x1c   : > { %s1166_s18 = sshll.u32 (%p1592_p5), %s1493_s28, 3  ;;  %s1165_s19 = sshll.u32 (%p1592_p5), %s238_s17, 4 }
  0x1d   : > { %s242_s20 = sadd.s32 (%p1592_p5), %s1489_s27, %s1166_s18  ;;  %s1785_s0 = sld [smem:[#allocation10_spill]] (%p1592_p5) }
  0x1e   : > { %s1167_s8 = sshll.u32 (%p1592_p5), %s242_s20, 2  ;;  %s240_s14 = scalar_lea.vmem (%p1592_p5), [#allocation5], %s1165_s19 }
  0x23   : > { %s244_s13 = scalar_lea.vmem %s1785_s0, %s1167_s8 }
  0x24   : > { %v260_v0 = vld [vmem:[%s244_s13] sm:$0xf]  ;;  %v262_v1 = vld [vmem:[%s244_s13 + $0x8] sm:$0xf]  ;;  %v264_v2 = vld [vmem:[%s244_s13 + $0x10] sm:$0xf] }
  0x25   : > { %261 = vst [vmem:[%s240_s14] sm:$0xf] %v260_v0  ;;  %263 = vst [vmem:[%s240_s14 + $0x4] sm:$0xf] %v262_v1  ;;  %v266_v3 = vld [vmem:[%s244_s13 + $0x18] sm:$0xf] }
  0x26   : > { %265 = vst [vmem:[%s240_s14 + $0x8] sm:$0xf] %v264_v2  ;;  %267 = vst [vmem:[%s240_s14 + $0xc] sm:$0xf] %v266_v3 }
  0x27 PF: > { %298 = sbr.rel (!%p1592_p5) target bundleno = 51 (0x33), region = 69  ;;  %s300_s15 = sand.u32 (%p1592_p5), 1, %s1469_s22  }
  0x28   : > { %s1169_s17 = sshll.u32 (%p1592_p5), %s1493_s28, 4  ;;  %s1168_s9 = sshll.u32 (%p1592_p5), %s300_s15, 4 }
  0x29   : > { %s304_s18 = sadd.s32 (%p1592_p5), %s1489_s27, %s1169_s17  ;;  %s1786_s1 = sld [smem:[#allocation11_spill]] (%p1592_p5) }
  0x2a   : > { %s1170_s20 = sshll.u32 (%p1592_p5), %s304_s18, 2  ;;  %s302_s13 = scalar_lea.vmem (%p1592_p5), [#allocation6], %s1168_s9 }
  0x2f   : > { %s306_s19 = scalar_lea.vmem %s1786_s1, %s1170_s20 }
  0x30   : > { %v322_v4 = vld [vmem:[%s306_s19] sm:$0xf]  ;;  %v324_v5 = vld [vmem:[%s306_s19 + $0x8] sm:$0xf]  ;;  %v326_v6 = vld [vmem:[%s306_s19 + $0x10] sm:$0xf] }
  0x31   : > { %323 = vst [vmem:[%s302_s13] sm:$0xf] %v322_v4  ;;  %325 = vst [vmem:[%s302_s13 + $0x4] sm:$0xf] %v324_v5  ;;  %v328_v7 = vld [vmem:[%s306_s19 + $0x18] sm:$0xf] }
  0x32   : > { %327 = vst [vmem:[%s302_s13 + $0x8] sm:$0xf] %v326_v6  ;;  %329 = vst [vmem:[%s302_s13 + $0xc] sm:$0xf] %v328_v7 }
  0x33 PF: > { %p1171_p10 = scmp.ge.s32.totalorder %s1497_s29, 1  ;;  %p376_p11 = scmp.lt.s32.totalorder %s1497_s29, 9 }
  0x35   : > { %p377_p12 = pnand %p1171_p10, %p376_p11 }
  0x36   : > { %s383_s10 = sand.u32 (!%p377_p12), 1, %s1465_s21   ;;  %p433_p13 = scmp.lt.s32.totalorder (!%p377_p12), %s1481_s25, 1 }
  0x37   : > { %380 = sbr.rel (%p377_p12) target bundleno = 855 (0x357), region = 118  ;;  %s1634_s14 = sshll.u32 (!%p377_p12), %s383_s10, 4 }
  0x38   : > { %s1174_s15 = sshll.u32 (!%p377_p12), %s383_s10, 5  ;;  %s385_s1 = scalar_lea.vmem (!%p377_p12), [#allocation5], %s1634_s14 }
  0x39   : > { %s392_s21 = scalar_lea.vmem (!%p377_p12), [#allocation6], %s1634_s14  ;;  %s1647_s7 = scalar_lea.vmem (!%p377_p12), [#allocation7], %s1174_s15 }
  0x3a   : > { %p1179_p0 = scmp.ne.s32.totalorder (!%p377_p12), %s1473_s23, 0 }
  0x3e   : > { %s434_s17 = scalar_select %p433_p13, %s1481_s25, 1 }
  0x3f   : > { %448 = sbr.rel (%p1179_p0) target bundleno = 70 (0x46), region = 130  ;;  %v1499_v8 = vmov (!%p1179_p0), -inf   ;;  %v1500_v9 = vmov (!%p1179_p0), 0.0  }
  0x40   : > { %s1217_s9 = sshll.u32 %s434_s17, 7  ;;  %s1218_s18 = sshll.u32 %s434_s17, 6  ;;  %449 = vst [vmem:[#allocation2] sm:$0x1] (!%p1179_p0), %v1499_v8  ;;  %450 = vst [vmem:[#allocation3] sm:$0x1] (!%p1179_p0), %v1500_v9 }
  0x41   : > { %s437_s12 = scalar_lea.vmem %s1772_s2, %s1217_s9  ;;  %s1643_s0 = scalar_lea.vmem %s1773_s3, %s1218_s18  ;;  %451 = vst [vmem:[#allocation4] sm:$0xff] (!%p1179_p0), %v1500_v9  ;;  %452 = vst [vmem:[#allocation4 + $0x8] sm:$0xff] (!%p1179_p0), %v1500_v9 }
  0x42   : > { %453 = vst [vmem:[#allocation4 + $0x10] sm:$0xff] (!%p1179_p0), %v1500_v9  ;;  %454 = vst [vmem:[#allocation4 + $0x18] sm:$0xff] (!%p1179_p0), %v1500_v9 }
  0x46 PF: > { %v1375_v10 = vld [vmem:[%s392_s21] sm:$0xff]   ;;  %s1180_s10 = sshll.u32 %s1473_s23, 7  ;;  %v1376_v11 = vld [vmem:[%s392_s21 + $0x8] sm:$0xff]   ;;  %vm540_vm0 = vcmask 261120   ;;  %v688_v54 = vlaneseq  ;;  %p1207_p1 = scmp.ne.s32.totalorder %s1473_s23, 1 }
  0x47   : > { %s460_s17 = sshra.s32 %s1180_s10, 3  ;;  %1252 = vmatprep.subr.bf16.mxu0 %v1375_v10  ;;  %s480_s18 = sshra.s32 %s1180_s10, 7  ;;  %v662_v59 = vld [vmem:[#allocation2] sm:$0x1] }
  0x48   : > { %s1181_s15 = sshll.u32 %s460_s17, 2  ;;  %1253 = vmatpush3.bf16.msra.mxu0 %v1375_v10  ;;  %s1182_s20 = sshll.u32 %s480_s18, 2  ;;  %v689_v57 = vshrl.u32 %v688_v54, 7 }
  0x49   : > { %s463_s9 = scalar_lea.vmem %s437_s12, %s1181_s15  ;;  %1254 = vmatprep.subr.bf16.mxu0 %v1376_v11  ;;  %s1660_s8 = scalar_lea.vmem %s1643_s0, %s1182_s20 }
  0x4a   : > { %v1377_v12 = vld [vmem:[%s463_s9] sm:$0xff]   ;;  %v1378_v13 = vld [vmem:[%s463_s9 + $0x8] sm:$0xff]   ;;  %v1379_v14 = vld [vmem:[%s463_s9 + $0x10] sm:$0xff]   ;;  %v1681_v61 = vsub.s32 0, %v689_v57 }
  0x4b   : > { %1256 = vmatprep.mubr.msk.bf16.mxu0 %vm540_vm0, %v1377_v12  ;;  %v1380_v15 = vld [vmem:[%s463_s9 + $0x18] sm:$0xff]   ;;  %v1381_v16 = vld [vmem:[%s463_s9 + $0x20] sm:$0xff]   ;;  %v1382_v17 = vld [vmem:[%s463_s9 + $0x28] sm:$0xff]  }
  0x4c   : > { %1255 = vmatpush3.bf16.msra.mxu0 %v1376_v11  ;;  %v1383_v18 = vld [vmem:[%s463_s9 + $0x30] sm:$0xff]   ;;  %v1384_v19 = vld [vmem:[%s463_s9 + $0x38] sm:$0xff]   ;;  %v1385_v20 = vld [vmem:[%s1660_s8 + $0x20] ss:$8 sps:$4 sm:$0xff]  }
  0x4d   : > { %1288 = vmatprep.mubr.bf16.mxu1 %v1385_v20 }
  0x4f   : > { %1257 = vmatmul.mubr.msk.bf16.vlgmr.msra.gmra.mrb[0].mxu0 %vm540_vm0, %v1378_v13 }
  0x50   : > { %1260 = vmatprep.mubr.msk.bf16.mxu0 %vm540_vm0, %v1379_v14 }
  0x57   : > { %1261 = vmatmul.mubr.msk.bf16.gmra.mrb[4].mxu0 %vm540_vm0, %v1380_v15 }
  0x58   : > { %1264 = vmatprep.mubr.msk.bf16.mxu0 %vm540_vm0, %v1381_v16 }
  0x5f   : > { %1265 = vmatmul.mubr.msk.bf16.gmra.mrb[8].mxu0 %vm540_vm0, %v1382_v17 }
  0x60   : > { %1268 = vmatprep.mubr.msk.bf16.mxu0 %vm540_vm0, %v1383_v18 }
  0x67   : > { %1269 = vmatmul.mubr.msk.bf16.gmra.mrb[12].mxu0 %vm540_vm0, %v1384_v19 }
 0x122   : > { %v1663_v21 = vpop.f32.mrb[0].mxu0 }
 0x123   : > { %v599_v22 = vpop.f32.mrb[1].mxu0 }
 0x124   : > { %v1665_v23 = vpop.f32.mrb[2].mxu0 }
 0x125   : > { %v602_v24 = vpop.f32.mrb[3].mxu0 }
 0x12a   : > { %v1667_v25 = vpop.f32.mrb[4].mxu0 }
 0x12b   : > { %v665_v26 = vmax.f32 %v1663_v21, %v1667_v25  ;;  %v615_v27 = vpop.f32.mrb[5].mxu0 }
 0x12c   : > { %v663_v28 = vmax.f32 %v599_v22, %v615_v27  ;;  %v1263_v29 = vpop.f32.mrb[6].mxu0 }
 0x12d   : > { %v666_v30 = vmax.f32 %v1665_v23, %v1263_v29  ;;  %v618_v31 = vpop.f32.mrb[7].mxu0 }
 0x12e   : > { %v664_v32 = vmax.f32 %v602_v24, %v618_v31 }
 0x132   : > { %v1672_v33 = vpop.f32.mrb[8].mxu0 }
 0x133   : > { %v669_v34 = vmax.f32 %v665_v26, %v1672_v33  ;;  %v631_v35 = vpop.f32.mrb[9].mxu0 }
 0x134   : > { %v667_v36 = vmax.f32 %v663_v28, %v631_v35  ;;  %v1267_v37 = vpop.f32.mrb[10].mxu0 }
 0x135   : > { %v670_v38 = vmax.f32 %v666_v30, %v1267_v37  ;;  %v634_v39 = vpop.f32.mrb[11].mxu0 }
 0x136   : > { %v668_v40 = vmax.f32 %v664_v32, %v634_v39 }
 0x13a   : > { %v1675_v41 = vpop.f32.mrb[12].mxu0 }
 0x13b   : > { %v673_v42 = vmax.f32 %v669_v34, %v1675_v41  ;;  %v647_v43 = vpop.f32.mrb[13].mxu0 }
 0x13c   : > { %v671_v44 = vmax.f32 %v667_v36, %v647_v43  ;;  %v1678_v45 = vpop.f32.mrb[14].mxu0 }
 0x13d   : > { %v674_v46 = vmax.f32 %v670_v38, %v1678_v45  ;;  %v650_v47 = vpop.f32.mrb[15].mxu0 }
 0x13e   : > { %v672_v48 = vmax.f32 %v668_v40, %v650_v47 }
 0x13f   : > { %v676_v49 = vmax.f32 %v673_v42, %v674_v46 }
 0x140   : > { %v675_v50 = vmax.f32 %v671_v44, %v672_v48 }
 0x142   : > { %v677_v51 = vmax.f32 %v675_v50, %v676_v49 }
 0x144   : > { %v678_v52 = vrot.slane %v677_v51, 4 }
 0x146   : > { %v679_v53 = vmax.f32 %v677_v51, %v678_v52 }
 0x148   : > { %v680_v55 = vrot.slane %v679_v53, 2 }
 0x14a   : > { %v681_v56 = vmax.f32 %v679_v53, %v680_v55 }
 0x14c   : > { %v682_v58 = vrot.slane %v681_v56, 1 }
 0x14e   : > { %v683_v60 = vmax.f32 %v681_v56, %v682_v58 }
 0x150   : > { %v684_v62 = vmax.f32 %v662_v59, %v683_v60 }
 0x152   : > { %v685_v63 = vsub.f32 %v662_v59, %v684_v62  ;;  %v691_v0 = vrot.slane %v684_v62, %v1681_v61  ;;  %841 = vst [vmem:[#allocation2] sm:$0x1] %v684_v62  ;;  %v1386_v59 = vld [vmem:[%s1660_s8 + $0x30] ss:$8 sps:$4 sm:$0xff]  }
 0x154   : > { %1387 = vpow2.f32 %v685_v63  ;;  %v693_v1 = vsub.f32 %v599_v22, %v691_v0  ;;  %v694_v2 = vsub.f32 %v602_v24, %v691_v0  ;;  %v695_v3 = vsub.f32 %v1663_v21, %v691_v0 }
 0x155   : > { %v696_v4 = vsub.f32 %v1665_v23, %v691_v0  ;;  %v697_v5 = vsub.f32 %v615_v27, %v691_v0  ;;  %v698_v6 = vsub.f32 %v618_v31, %v691_v0  ;;  %v699_v7 = vsub.f32 %v1667_v25, %v691_v0 }
 0x156   : > { %v700_v8 = vsub.f32 %v1263_v29, %v691_v0  ;;  %v701_v9 = vsub.f32 %v631_v35, %v691_v0  ;;  %v702_v10 = vsub.f32 %v634_v39, %v691_v0  ;;  %v703_v11 = vsub.f32 %v1672_v33, %v691_v0 }
 0x157   : > { %v704_v12 = vsub.f32 %v1267_v37, %v691_v0  ;;  %v705_v13 = vsub.f32 %v647_v43, %v691_v0  ;;  %v706_v14 = vsub.f32 %v650_v47, %v691_v0  ;;  %v707_v15 = vsub.f32 %v1675_v41, %v691_v0 }
 0x158   : > { %1389 = vpow2.f32 %v693_v1  ;;  %v708_v16 = vsub.f32 %v1678_v45, %v691_v0  ;;  %v725_v0 = vld [vmem:[#allocation3] sm:$0x1] }
 0x159   : > { %1391 = vpow2.f32 %v694_v2 }
 0x15a   : > { %1393 = vpow2.f32 %v695_v3 }
 0x15b   : > { %1395 = vpow2.f32 %v696_v4 }
 0x15c   : > { %1397 = vpow2.f32 %v697_v5  ;;  %v752_v5 = vld [vmem:[#allocation4 + $0x10] sm:$0xff] }
 0x15d   : > { %1399 = vpow2.f32 %v698_v6  ;;  %v750_v6 = vld [vmem:[#allocation4] sm:$0xff] }
 0x15e   : > { %v1690_v17 = vpop.eup %1387  ;;  %1401 = vpow2.f32 %v699_v7  ;;  %v753_v7 = vld [vmem:[#allocation4 + $0x18] sm:$0xff] }
 0x15f   : > { %1403 = vpow2.f32 %v700_v8  ;;  %v1694_v18 = vrot.slane %v1690_v17, %v1681_v61  ;;  %v726_v2 = vmul.f32 %v1690_v17, %v725_v0 }
 0x160   : > { %1405 = vpow2.f32 %v701_v9  ;;  %v751_v9 = vld [vmem:[#allocation4 + $0x8] sm:$0xff] }
 0x161   : > { %1407 = vpow2.f32 %v702_v10  ;;  %v762_v8 = vmul.f32 %v1694_v18, %v752_v5  ;;  %v761_v17 = vmul.f32 %v1694_v18, %v751_v9 }
 0x162   : > { %v1390_v19 = vpop.eup %1389  ;;  %1409 = vpow2.f32 %v703_v11  ;;  %v760_v11 = vmul.f32 %v1694_v18, %v750_v6 }
 0x163   : > { %v1392_v20 = vpop.eup %1391  ;;  %1411 = vpow2.f32 %v704_v12 }
 0x164   : > { %v1394_v21 = vpop.eup %1393  ;;  %1413 = vpow2.f32 %v705_v13  ;;  %v727_v22 = vadd.f32 %v1392_v20, %v1390_v19  ;;  %v764_v23 = vpack.c.bf16 %v1392_v20, %v1390_v19 }
 0x165   : > { %v1396_v24 = vpop.eup %1395  ;;  %1415 = vpow2.f32 %v706_v14  ;;  %v763_v14 = vmul.f32 %v1694_v18, %v753_v7  ;;  %v870_v18 = vld [vmem:[%s1775_s5 + $0x10] sm:$0xff] (!%p1207_p1) }
 0x166   : > { %v1398_v25 = vpop.eup %1397  ;;  %1417 = vpow2.f32 %v707_v15  ;;  %v728_v26 = vadd.f32 %v1394_v21, %v727_v22  ;;  %1272 = vmatprep.subr.bf16.mxu1 %v764_v23  ;;  %v765_v27 = vpack.c.bf16 %v1396_v24, %v1394_v21 }
 0x167   : > { %v1400_v28 = vpop.eup %1399  ;;  %1273 = vmatpush3.bf16.msra.mxu1 %v764_v23  ;;  %1419 = vpow2.f32 %v708_v16  ;;  %v1501_v23 = vmov (!%p1207_p1), 0  }
 0x168   : > { %v1402_v29 = vpop.eup %1401  ;;  %v729_v30 = vadd.f32 %v1396_v24, %v728_v26  ;;  %1274 = vmatprep.subr.bf16.mxu1 %v765_v27  ;;  %v766_v31 = vpack.c.bf16 %v1400_v28, %v1398_v25  ;;  %1422 = vset.pattern.permute.xlu1 (!%p1207_p1), %v1501_v23  ;;  %v1423_v24 = vld [vmem:[%s1774_s4] sm:$0xff] (!%p1207_p1)   ;;  %v871_v26 = vld [vmem:[%s1775_s5 + $0x18] sm:$0xff] (!%p1207_p1) }
 0x169   : > { %v1404_v32 = vpop.eup %1403  ;;  %1421 = vset.pattern.permute.xlu0 (!%p1207_p1), %v1501_v23  ;;  %1296 = vmatprep.mubr.msk.bf16.mxu0 (!%p1207_p1), %vm540_vm0, %v1423_v24 }
 0x16a   : > { %v1406_v33 = vpop.eup %1405  ;;  %v730_v34 = vadd.f32 %v1398_v25, %v729_v30  ;;  %v767_v35 = vpack.c.bf16 %v1404_v32, %v1402_v29  ;;  %884 = vperm.xlu1 (!%p1207_p1), %1422, %v870_v18   ;;  %v868_v25 = vld [vmem:[%s1775_s5] sm:$0xff] (!%p1207_p1) }
 0x16b   : > { %v1408_v36 = vpop.eup %1407  ;;  %1275 = vmatpush3.bf16.msra.mxu1 %v765_v27  ;;  %874 = vperm.xlu0 (!%p1207_p1), %1421, %v868_v25   ;;  %v869_v27 = vld [vmem:[%s1775_s5 + $0x8] sm:$0xff] (!%p1207_p1) }
 0x16c   : > { %v1410_v37 = vpop.eup %1409  ;;  %v731_v38 = vadd.f32 %v1400_v28, %v730_v34  ;;  %1276 = vmatprep.subr.bf16.mxu1 %v766_v31  ;;  %v768_v39 = vpack.c.bf16 %v1408_v36, %v1406_v33 }
 0x16d   : > { %v1412_v40 = vpop.eup %1411 }
 0x16e   : > { %v1414_v41 = vpop.eup %1413  ;;  %v732_v42 = vadd.f32 %v1402_v29, %v731_v38  ;;  %v769_v43 = vpack.c.bf16 %v1412_v40, %v1410_v37  ;;  %889 = vperm.xlu1 (!%p1207_p1), %1422, %v871_v26  }
 0x16f   : > { %v1416_v44 = vpop.eup %1415  ;;  %1277 = vmatpush3.bf16.msra.mxu1 %v766_v31  ;;  %879 = vperm.xlu0 (!%p1207_p1), %1421, %v869_v27  }
 0x170   : > { %v1418_v45 = vpop.eup %1417  ;;  %v733_v46 = vadd.f32 %v1404_v32, %v732_v42  ;;  %1278 = vmatprep.subr.bf16.mxu1 %v767_v35  ;;  %v770_v47 = vpack.c.bf16 %v1416_v44, %v1414_v41 }
 0x171   : > { %v1420_v48 = vpop.eup %1419 }
 0x172   : > { %v734_v49 = vadd.f32 %v1406_v33, %v733_v46  ;;  %v771_v50 = vpack.c.bf16 %v1420_v48, %v1418_v45 }
 0x173   : > { %1279 = vmatpush3.bf16.msra.mxu1 %v767_v35 }
 0x174   : > { %v735_v51 = vadd.f32 %v1408_v36, %v734_v49  ;;  %1280 = vmatprep.subr.bf16.mxu1 %v768_v39 }
 0x176   : > { %v736_v52 = vadd.f32 %v1410_v37, %v735_v51 }
 0x177   : > { %1281 = vmatpush3.bf16.msra.mxu1 %v768_v39 }
 0x178   : > { %v737_v53 = vadd.f32 %v1412_v40, %v736_v52  ;;  %1282 = vmatprep.subr.bf16.mxu1 %v769_v43  ;;  %v1424_v40 = vld [vmem:[%s1774_s4 + $0x8] sm:$0xff] (!%p1207_p1)  }
 0x17a   : > { %v738_v54 = vadd.f32 %v1414_v41, %v737_v53 }
 0x17b   : > { %1283 = vmatpush3.bf16.msra.mxu1 %v769_v43  ;;  %v1220_v43 = vld [vmem:[%s385_s1] sm:$0xff] (!%p1207_p1)  }
 0x17c   : > { %v739_v55 = vadd.f32 %v1416_v44, %v738_v54  ;;  %1284 = vmatprep.subr.bf16.mxu1 %v770_v47  ;;  %v1221_v46 = vunpack.c.l.bf16 (!%p1207_p1), %v1220_v43  ;;  %v1222_v53 = vunpack.c.h.bf16 (!%p1207_p1), %v1220_v43 }
 0x17e   : > { %v740_v56 = vadd.f32 %v1418_v45, %v739_v55 }
 0x17f   : > { %1285 = vmatpush3.bf16.msra.mxu1 %v770_v47 }
 0x180   : > { %v741_v57 = vadd.f32 %v1420_v48, %v740_v56  ;;  %1286 = vmatprep.subr.bf16.mxu1 %v771_v50 }
 0x182   : > { %v742_v58 = vrot.slane %v741_v57, 4 }
 0x183   : > { %1287 = vmatpush3.bf16.msra.mxu1 %v771_v50 }
 0x184   : > { %v743_v60 = vadd.f32 %v742_v58, %v741_v57 }
 0x186   : > { %v744_v62 = vrot.slane %v743_v60, 2  ;;  %1289 = vmatmul.mubr.bf16.vlgmr.msra.gmra.mrb[0].mxu1 %v1386_v59 }
 0x188   : > { %v745_v63 = vadd.f32 %v744_v62, %v743_v60 }
 0x18a   : > { %v746_v1 = vrot.slane %v745_v63, 1 }
 0x18c   : > { %v747_v3 = vadd.f32 %v746_v1, %v745_v63 }
 0x18e   : > { %v748_v4 = vadd.f32 %v747_v3, %v726_v2 }
 0x190   : > { %749 = vst [vmem:[#allocation3] sm:$0x1] %v748_v4 }
 0x197   : > { %v846_v22 = vld [vmem:[#allocation3] sm:$0x1] (!%p1207_p1) }
 0x198   : > { %1425 = vrcp.f32 (!%p1207_p1), %v846_v22 }
 0x1a2   : > { %v1426_v29 = vpop.eup (!%p1207_p1), %1425 }
 0x1a3   : > { %v856_v33 = vrot.slane (!%p1207_p1), %v1426_v29, %v1681_v61  ;;  %v1227_v61 = vld [vmem:[%s385_s1 + $0x8] sm:$0xff] (!%p1207_p1)  }
 0x1a4   : > { %v1225_v44 = vunpack.c.l.bf16 (!%p1207_p1), %v1227_v61  ;;  %v1226_v49 = vunpack.c.h.bf16 (!%p1207_p1), %v1227_v61 }
 0x1e9   : > { %v885_v41 = vpop.permute.xlu1 (!%p1207_p1), %884 }
 0x1ea   : > { %v875_v42 = vpop.permute.xlu0 (!%p1207_p1), %874 }
 0x1ed   : > { %v890_v50 = vpop.permute.xlu1 (!%p1207_p1), %889 }
 0x1ee   : > { %v880_v54 = vpop.permute.xlu0 (!%p1207_p1), %879 }
 0x259   : > { %v1290_v10 = vpop.f32.mrb[0].mxu1  ;;  %845 = sbr.rel (%p1207_p1) target bundleno = 847 (0x34f), region = 134 }
 0x25a   : > { %v835_v12 = vadd.f32 %v1290_v10, %v762_v8  ;;  %v818_v13 = vpop.f32.mrb[1].mxu1 }
 0x25b   : > { %v833_v15 = vadd.f32 %v818_v13, %v760_v11  ;;  %v1291_v16 = vpop.f32.mrb[2].mxu1 }
 0x25c   : > { %839 = vst [vmem:[#allocation4 + $0x10] sm:$0xff] %v835_v12  ;;  %v836_v19 = vadd.f32 %v1291_v16, %v763_v14  ;;  %v821_v20 = vpop.f32.mrb[3].mxu1 }
 0x25d   : > { %837 = vst [vmem:[#allocation4] sm:$0xff] %v833_v15  ;;  %v834_v21 = vadd.f32 %v821_v20, %v761_v17 }
 0x25e   : > { %840 = vst [vmem:[#allocation4 + $0x18] sm:$0xff] %v836_v19 }
 0x25f   : > { %838 = vst [vmem:[#allocation4 + $0x8] sm:$0xff] %v834_v21 }
 0x263   : > { %v850_v31 = vld [vmem:[#allocation4 + $0x10] sm:$0xff] }
 0x264   : > { %v848_v28 = vld [vmem:[#allocation4] sm:$0xff]  ;;  %v860_v36 = vmul.f32 %v856_v33, %v850_v31 }
 0x265   : > { %v851_v32 = vld [vmem:[#allocation4 + $0x18] sm:$0xff]  ;;  %v858_v34 = vmul.f32 %v856_v33, %v848_v28 }
 0x266   : > { %v849_v30 = vld [vmem:[#allocation4 + $0x8] sm:$0xff]  ;;  %v861_v37 = vmul.f32 %v856_v33, %v851_v32 }
 0x267   : > { %v859_v35 = vmul.f32 %v856_v33, %v849_v30 }
 0x268   : > { %v867_v39 = vpack.c.bf16 %v861_v37, %v860_v36 }
 0x269   : > { %v866_v38 = vpack.c.bf16 %v859_v35, %v858_v34 }
 0x26b   : > { %1292 = vmatprep.subr.bf16.mxu0 %v866_v38 }
 0x26c   : > { %1293 = vmatpush3.bf16.msra.mxu0 %v866_v38 }
 0x26d   : > { %1294 = vmatprep.subr.bf16.mxu0 %v867_v39 }
 0x270   : > { %1295 = vmatpush3.bf16.msra.mxu0 %v867_v39 }
 0x273   : > { %1297 = vmatmul.mubr.msk.bf16.vlgmr.msra.gmra.mrb[0].mxu0 %vm540_vm0, %v1424_v40 }
 0x346   : > { %v1298_v45 = vpop.f32.mrb[0].mxu0 }
 0x347   : > { %v951_v47 = vadd.f32 %v1298_v45, %v885_v41  ;;  %v942_v48 = vpop.f32.mrb[1].mxu0 }
 0x348   : > { %v943_v51 = vadd.f32 %v942_v48, %v875_v42  ;;  %v1299_v52 = vpop.f32.mrb[2].mxu0 }
 0x349   : > { %v967_v55 = vadd.f32 %v1225_v44, %v951_v47  ;;  %v954_v56 = vadd.f32 %v1299_v52, %v890_v50  ;;  %v945_v57 = vpop.f32.mrb[3].mxu0 }
 0x34a   : > { %v965_v58 = vadd.f32 %v1221_v46, %v943_v51  ;;  %v946_v59 = vadd.f32 %v945_v57, %v880_v54 }
 0x34b   : > { %971 = vst [vmem:[%s1647_s7 + $0x10] sm:$0xff] %v967_v55  ;;  %v968_v60 = vadd.f32 %v1226_v49, %v954_v56 }
 0x34c   : > { %969 = vst [vmem:[%s1647_s7] sm:$0xff] %v965_v58  ;;  %v966_v62 = vadd.f32 %v1222_v53, %v946_v59 }
 0x34d   : > { %972 = vst [vmem:[%s1647_s7 + $0x18] sm:$0xff] %v968_v60 }
 0x34e   : > { %970 = vst [vmem:[%s1647_s7 + $0x8] sm:$0xff] %v966_v62 }
 0x34f PF: > { %979 = sbr.rel (!%p1599_p6) target bundleno = 855 (0x357), region = 138  ;;  %s1213_s1 = sshll.u32 (%p1599_p6), %s1481_s25, 3 }
 0x350   : > { %s981_s14 = sadd.s32 (%p1599_p6), %s1477_s24, %s1213_s1 }
 0x351   : > { %s1214_s8 = sshll.u32 (%p1599_p6), %s981_s14, 3 }
 0x352   : > { %v1021_v1 = vld [vmem:[%s1647_s7 + $0x10] sm:$0xff] (%p1599_p6)  ;;  %s983_s19 = scalar_lea.vmem (%p1599_p6), %s1776_s6, %s1214_s8 }
 0x353   : > { %v1017_v63 = vld [vmem:[%s1647_s7] sm:$0xff] (%p1599_p6)  ;;  %1022 = vst [vmem:[%s983_s19 + $0x20] sm:$0xff] (%p1599_p6), %v1021_v1 }
 0x354   : > { %v1023_v2 = vld [vmem:[%s1647_s7 + $0x18] sm:$0xff] (%p1599_p6)  ;;  %1018 = vst [vmem:[%s983_s19] sm:$0xff] (%p1599_p6), %v1017_v63 }
 0x355   : > { %v1019_v0 = vld [vmem:[%s1647_s7 + $0x8] sm:$0xff] (%p1599_p6)  ;;  %1024 = vst [vmem:[%s983_s19 + $0x30] sm:$0xff] (%p1599_p6), %v1023_v2 }
 0x356   : > { %1020 = vst [vmem:[%s983_s19 + $0x10] sm:$0xff] %v1019_v0 }
 0x357 PF: > { %s16_s29 = sadd.s32 1, %s1497_s29   ;;  %s1787_s7 = sld [smem:[#allocation8_spill]] }
 0x358   : > { %p13_p2 = scmp.ge.s32.totalorder %s16_s29, 10   ;;  %s1788_s11 = sld [smem:[#allocation9_spill]] }
 0x359   : > { %s1789_s21 = smov %s1469_s22  ;;  %s1790_s22 = smov %s1611_s16 }
 0x35a   : > { %s1791_s23 = smov %s1485_s26  ;;  %s1792_s24 = smov %s1489_s27 }
 0x35b   : > { %s1793_s25 = smov %s1493_s28  ;;  %s1794_s26 = smov %s1798_s30 }
 0x35c   :  { %15 = sbr.rel (!%p13_p2) target bundleno = 8 (0x8), region = 223 }
 0x35d   : > { %s1795_s27 = smov %s1787_s7 }
 0x35e   : > { %s1796_s28 = smov %s1788_s11 }

</bundles_post_ra>
